<compile_context>
chip_gen: v6e
topology: v6e:2x2x1
jax: 0.10.0
libtpu: 0.0.40
codegen_flags: <defaults>
</compile_context>

<pallas_src>
import jax
import jax.numpy as jnp
from jax import lax
from jax.experimental import pallas as pl
from jax.experimental.pallas import tpu as pltpu


def bilstm_att_kernel(
    xcat_ref,      # (L*Bp, 2*I)  f32  row t*Bp+b = [embeds(t,b) | embeds(L-1-t,b)]
    w_ih2_ref,     # (2*I, G)     f32  rows 0:I -> fwd gate cols, rows I:2I -> bwd gate cols
    w_hh_ref,      # (H, G)       f32  block-diagonal; gate blocks [i|f|o|g], each [fwd|bwd]
    bias_ref,      # (1, G)       f32  b_ih + b_hh, same column layout
    h0_ref,        # (Bp, H)      f32  [fwd | bwd]
    c0_ref,        # (Bp, H)      f32
    att_wf_ref,    # (Bp, H2)     f32  attention weight, forward half
    att_wb_ref,    # (Bp, H2)     f32  attention weight, backward half
    rel_f_ref,     # (H2, T)      f32  relation_embeds^T, forward rows
    rel_b_ref,     # (H2, T)      f32  relation_embeds^T, backward rows
    rel_bias_ref,  # (Bp, T)      f32
    out_ref,       # (Bp, T)      f32
    xproj_scr,     # (L*Bp, G)    f32  scratch: per-direction-selected input projection
    hs_f_scr,      # (L, Bp, H2)  f32  scratch: forward hidden history (time-aligned)
    hs_b_scr,      # (L, Bp, H2)  f32  scratch: backward hidden history (time-aligned)
):
    L, Bp, H2 = hs_f_scr.shape
    H = 2 * H2
    G = 4 * H

    # ---- 1) hoisted input projection: ONE MXU matmul for all timesteps & both directions.
    # Because xcat rows already carry [x(t) | x(L-1-t)] and w_ih2 routes the halves to the
    # forward / backward gate columns, row t*Bp+b of xproj is the fully direction-selected
    # projection for step t: the recurrence body needs a single aligned load per step.
    xproj_scr[...] = (
        jnp.dot(xcat_ref[...], w_ih2_ref[...], preferred_element_type=jnp.float32)
        + bias_ref[...])

    w_hh = w_hh_ref[...]

    # ---- 2) fused bidirectional recurrence (gate blocks [i, f, o, g]) ----
    def step(t, carry):
        h, c = carry                                               # (Bp, H) f32
        start = t * Bp
        if not isinstance(start, int):                             # dynamic index path
            start = pl.multiple_of(start, 8)                       # Bp is a multiple of 8
        gates = xproj_scr[pl.ds(start, Bp), :] + jnp.dot(
            h, w_hh, preferred_element_type=jnp.float32)           # (Bp, G)
        # sigmoid only on i/f/o columns, tanh only on g columns (half the EUP work/step).
        sig = jax.nn.sigmoid(gates[:, : 3 * H])
        g_g = jnp.tanh(gates[:, 3 * H:])
        i_g = sig[:, 0:H]
        f_g = sig[:, H:2 * H]
        o_g = sig[:, 2 * H:3 * H]
        c_new = f_g * c + i_g * g_g
        h_new = o_g * jnp.tanh(c_new)
        # Lane-offset-0, leading-dim-indexed stores; the backward half goes straight to its
        # time-aligned slot, so no lane-offset masked RMW in the loop and no post-loop reverse.
        hs_f_scr[t] = h_new[:, :H2]
        hs_b_scr[L - 1 - t] = h_new[:, H2:]
        return h_new, c_new

    carry = (h0_ref[...], c0_ref[...])
    if L <= 32:
        # Full unroll: static indices + cross-step LLO scheduler visibility.
        for t in range(L):
            carry = step(t, carry)
    else:
        # TODO(synk): for production-length sequences also tile the time axis with a grid
        # (stream xproj/embeds chunks, keep h/c + hs in carried scratch) so VMEM stays
        # bounded on v7x (64 MiB physical) and the second TensorCore can be used.
        carry = lax.fori_loop(0, L, step, carry, unroll=8)

    # ---- 3) attention over time, vectorized over batch ----
    # TODO(synk): dropout_lstm is stochastic (train mode); identity here (eval mode).
    hsf = hs_f_scr[...]                                            # (L, Bp, H2)
    hsb = hs_b_scr[...]
    scores = (
        jnp.sum(jnp.tanh(hsf) * att_wf_ref[...][None], axis=-1, keepdims=True)
        + jnp.sum(jnp.tanh(hsb) * att_wb_ref[...][None], axis=-1, keepdims=True))  # (L,Bp,1)
    scores = scores - jnp.max(scores, axis=0, keepdims=True)
    e = jnp.exp(scores)
    a = e / jnp.sum(e, axis=0, keepdims=True)                      # softmax over time
    ctx_f = jnp.sum(hsf * a, axis=0)                               # (Bp, H2)
    ctx_b = jnp.sum(hsb * a, axis=0)                               # (Bp, H2)

    # ---- 4) relation scoring (MXU) + softmax over tags ----
    logits = (
        jnp.dot(jnp.tanh(ctx_f), rel_f_ref[...], preferred_element_type=jnp.float32)
        + jnp.dot(jnp.tanh(ctx_b), rel_b_ref[...], preferred_element_type=jnp.float32)
        + rel_bias_ref[...])                                       # (Bp, T)
    logits = logits - jnp.max(logits, axis=-1, keepdims=True)
    el = jnp.exp(logits)
    out_ref[...] = el / jnp.sum(el, axis=-1, keepdims=True)


def bilstm_att_forward(params, sentence, pos1, pos2, h0, c0):
    """Wrapper: embedding gathers, batch padding and weight re-layout, then one Pallas kernel."""
    B, L = sentence.shape
    T, H = params["relation_embeds"].shape
    H2 = H // 2
    G = 4 * H
    Bp = ((B + 7) // 8) * 8           # pad batch to full f32 sublane groups
    f32 = jnp.float32

    def pad_batch(x):                 # zero-pad leading (batch) dim B -> Bp
        return jnp.pad(x, ((0, Bp - B),) + ((0, 0),) * (x.ndim - 1))

    # embeds = cat(word, pos1, pos2)  -> time-major, [x(t) | x(L-1-t)] per row, flat (L*Bp, 2I)
    embeds = jnp.concatenate(
        [params["word_embeds"][sentence],
         params["pos1_embeds"][pos1],
         params["pos2_embeds"][pos2]], axis=2).astype(f32)         # (B, L, I)
    I = embeds.shape[-1]
    emb_tm = jnp.transpose(pad_batch(embeds), (1, 0, 2))           # (L, Bp, I)
    xcat = jnp.concatenate([emb_tm, emb_tm[::-1]], axis=-1)        # (L, Bp, 2I)
    xcat = xcat.reshape(L * Bp, 2 * I)

    # ---- weight re-layout: gate blocks [i | f | o | g], each block = [fwd H2 | bwd H2] ----
    GATE_ORDER = (0, 1, 3, 2)         # PyTorch row-block order is [i, f, g, o]

    def gate_cols(w, p):              # w: (rows, 4*H2) = PyTorch W.T
        return w[:, p * H2:(p + 1) * H2]

    w_ih_fT = params["w_ih_f"].T.astype(f32)                       # (I, 4*H2)
    w_ih_bT = params["w_ih_b"].T.astype(f32)
    zI = jnp.zeros((I, H2), f32)
    w_ih2 = jnp.concatenate(
        [jnp.concatenate(
            [jnp.concatenate([gate_cols(w_ih_fT, p), zI], axis=1),   # rows 0:I  -> fwd cols
             jnp.concatenate([zI, gate_cols(w_ih_bT, p)], axis=1)],  # rows I:2I -> bwd cols
            axis=0)
         for p in GATE_ORDER], axis=1)                             # (2I, G)

    w_hh_fT = params["w_hh_f"].T.astype(f32)                       # (H2, 4*H2)
    w_hh_bT = params["w_hh_b"].T.astype(f32)
    zH = jnp.zeros((H2, H2), f32)
    w_hh2 = jnp.concatenate(
        [jnp.concatenate(
            [jnp.concatenate([gate_cols(w_hh_fT, p), zH], axis=1),   # h_fwd rows
             jnp.concatenate([zH, gate_cols(w_hh_bT, p)], axis=1)],  # h_bwd rows
            axis=0)
         for p in GATE_ORDER], axis=1)                             # (H, G) block-diagonal

    b_f = (params["b_ih_f"] + params["b_hh_f"]).astype(f32)
    b_b = (params["b_ih_b"] + params["b_hh_b"]).astype(f32)
    bias2 = jnp.concatenate(
        [jnp.concatenate([b_f[p * H2:(p + 1) * H2], b_b[p * H2:(p + 1) * H2]])
         for p in GATE_ORDER])[None, :]                            # (1, G)

    h0_p = pad_batch(jnp.concatenate([h0[0], h0[1]], axis=-1).astype(f32))   # (Bp, H)
    c0_p = pad_batch(jnp.concatenate([c0[0], c0[1]], axis=-1).astype(f32))   # (Bp, H)

    att_w = params["att_weight"][:, 0, :].astype(f32)              # (B, H)
    att_wf = pad_batch(att_w[:, :H2])                              # (Bp, H2)
    att_wb = pad_batch(att_w[:, H2:])                              # (Bp, H2)
    rel = params["relation_embeds"].astype(f32)                    # (T, H)
    rel_f = rel[:, :H2].T                                          # (H2, T)
    rel_b = rel[:, H2:].T                                          # (H2, T)
    rel_bias_p = pad_batch(params["relation_bias"][..., 0].astype(f32))      # (Bp, T)

    vmem_spec = pl.BlockSpec(memory_space=pltpu.MemorySpace.VMEM)
    out = pl.pallas_call(
        bilstm_att_kernel,
        out_shape=jax.ShapeDtypeStruct((Bp, T), f32),
        in_specs=[vmem_spec] * 11,
        out_specs=vmem_spec,
        scratch_shapes=[
            pltpu.VMEM((L * Bp, G), f32),
            pltpu.VMEM((L, Bp, H2), f32),
            pltpu.VMEM((L, Bp, H2), f32),
        ],
        # Explicit scoped-VMEM bound (raises v5e's 16 MiB default, within v6e/v7x limits).
        compiler_params=pltpu.CompilerParams(vmem_limit_bytes=32 * 1024 * 1024),
    )(xcat, w_ih2, w_hh2, bias2, h0_p, c0_p, att_wf, att_wb, rel_f, rel_b, rel_bias_p)

    return out[:B]                                                 # == res.view(batch, -1)


def reference_forward(params, sentence, pos1, pos2, h0, c0):
    """Pure-JAX f32 reference replicating the PyTorch forward (eval mode)."""
    B, L = sentence.shape
    T, H = params["relation_embeds"].shape
    embeds = jnp.concatenate(
        [params["word_embeds"][sentence],
         params["pos1_embeds"][pos1],
         params["pos2_embeds"][pos2]], axis=2)
    embeds = jnp.transpose(embeds, (1, 0, 2))                      # (L, B, I)

    def lstm_dir(w_ih, w_hh, b_ih, b_hh, h, c, xs, reverse):
        if reverse:
            xs = xs[::-1]

        def step(carry, x):
            h, c = carry
            gates = x @ w_ih.T + h @ w_hh.T + b_ih + b_hh
            i, f, g, o = jnp.split(gates, 4, axis=-1)
            c = jax.nn.sigmoid(f) * c + jax.nn.sigmoid(i) * jnp.tanh(g)
            h = jax.nn.sigmoid(o) * jnp.tanh(c)
            return (h, c), h

        _, hs = jax.lax.scan(step, (h, c), xs)
        return hs[::-1] if reverse else hs

    hs_f = lstm_dir(params["w_ih_f"], params["w_hh_f"], params["b_ih_f"],
                    params["b_hh_f"], h0[0], c0[0], embeds, False)
    hs_b = lstm_dir(params["w_ih_b"], params["w_hh_b"], params["b_ih_b"],
                    params["b_hh_b"], h0[1], c0[1], embeds, True)
    lstm_out = jnp.concatenate([hs_f, hs_b], axis=-1)              # (L, B, H)
    Hm = jnp.transpose(lstm_out, (1, 2, 0))                        # (B, H, L)
    M = jnp.tanh(Hm)
    scores = jnp.einsum('bh,bhl->bl', params["att_weight"][:, 0, :], M)
    a = jax.nn.softmax(scores, axis=-1)
    att = jnp.tanh(jnp.einsum('bhl,bl->bh', Hm, a))
    relation = jnp.broadcast_to(params["relation_embeds"][None], (B, T, H))
    res = jnp.einsum('bth,bh->bt', relation, att) + params["relation_bias"][..., 0]
    return jax.nn.softmax(res, axis=1)


if __name__ == "__main__":
    # Small config consistent with the module's __init__.
    B, L = 2, 8
    VOCAB, POS_SIZE = 50, 20
    E, D = 32, 4                 # embedding_dim, pos_dim -> LSTM input I = 40
    H, T = 32, 8                 # hidden_dim, tag_size   -> per-direction H2 = 16
    H2 = H // 2

    key = jax.random.PRNGKey(0)
    ks = jax.random.split(key, 20)

    params = {
        "word_embeds":     jax.random.normal(ks[0], (VOCAB, E), jnp.float32) * 0.1,
        "pos1_embeds":     jax.random.normal(ks[1], (POS_SIZE, D), jnp.float32) * 0.1,
        "pos2_embeds":     jax.random.normal(ks[2], (POS_SIZE, D), jnp.float32) * 0.1,
        "relation_embeds": jax.random.normal(ks[3], (T, H), jnp.float32) * 0.1,
        "w_ih_f": jax.random.normal(ks[4], (4 * H2, E + 2 * D), jnp.float32) * 0.1,
        "w_hh_f": jax.random.normal(ks[5], (4 * H2, H2), jnp.float32) * 0.1,
        "b_ih_f": jax.random.normal(ks[6], (4 * H2,), jnp.float32) * 0.1,
        "b_hh_f": jax.random.normal(ks[7], (4 * H2,), jnp.float32) * 0.1,
        "w_ih_b": jax.random.normal(ks[8], (4 * H2, E + 2 * D), jnp.float32) * 0.1,
        "w_hh_b": jax.random.normal(ks[9], (4 * H2, H2), jnp.float32) * 0.1,
        "b_ih_b": jax.random.normal(ks[10], (4 * H2,), jnp.float32) * 0.1,
        "b_hh_b": jax.random.normal(ks[11], (4 * H2,), jnp.float32) * 0.1,
        "att_weight":    jax.random.normal(ks[12], (B, 1, H), jnp.float32),
        "relation_bias": jax.random.normal(ks[13], (B, T, 1), jnp.float32),
        # hidden2tag Linear is defined in __init__ but unused in forward; omitted.
    }

    sentence = jax.random.randint(ks[14], (B, L), 0, VOCAB)
    pos1 = jax.random.randint(ks[15], (B, L), 0, POS_SIZE)
    pos2 = jax.random.randint(ks[16], (B, L), 0, POS_SIZE)
    # init_hidden_lstm() uses torch.randn each forward; made a deterministic input here.
    h0 = jax.random.normal(ks[17], (2, B, H2), jnp.float32)
    c0 = jax.random.normal(ks[18], (2, B, H2), jnp.float32)

    out = bilstm_att_forward(params, sentence, pos1, pos2, h0, c0)
    out = jax.block_until_ready(out)

    ref = jax.block_until_ready(reference_forward(params, sentence, pos1, pos2, h0, c0))
    assert out.shape == (B, T)
    max_err = float(jnp.max(jnp.abs(out - ref)))
    # Whole pipeline is f32 now (bf16 recurrent operands dropped); typical error ~1e-5,
    # loose bound kept for MXU-precision robustness across TPU generations.
    assert max_err < 1e-2, f"mismatch vs reference: {max_err}"
    print("KERNEL_OK")
</pallas_src>

<mosaic_0001>
module attributes {stable_mosaic.version = 11 : i64} {
  func.func @bilstm_att_kernel(%arg0: memref<64x80xf32, #tpu.memory_space<vmem>>, %arg1: memref<80x128xf32, #tpu.memory_space<vmem>>, %arg2: memref<32x128xf32, #tpu.memory_space<vmem>>, %arg3: memref<1x128xf32, #tpu.memory_space<vmem>>, %arg4: memref<8x32xf32, #tpu.memory_space<vmem>>, %arg5: memref<8x32xf32, #tpu.memory_space<vmem>>, %arg6: memref<8x16xf32, #tpu.memory_space<vmem>>, %arg7: memref<8x16xf32, #tpu.memory_space<vmem>>, %arg8: memref<16x8xf32, #tpu.memory_space<vmem>>, %arg9: memref<16x8xf32, #tpu.memory_space<vmem>>, %arg10: memref<8x8xf32, #tpu.memory_space<vmem>>, %arg11: memref<8x8xf32, #tpu.memory_space<vmem>>, %arg12: memref<64x128xf32, #tpu.memory_space<vmem>>, %arg13: memref<8x8x16xf32, #tpu.memory_space<vmem>>, %arg14: memref<8x8x16xf32, #tpu.memory_space<vmem>>) attributes {dimension_semantics = [], scalar_prefetch = 0 : i64, scratch_operands = 3 : i64, tpu.core_type = #tpu.core_type<tc>} {
    %c0 = arith.constant 0 : index
    %c0_0 = arith.constant 0 : index
    %0 = vector.load %arg0[%c0, %c0_0] : memref<64x80xf32, #tpu.memory_space<vmem>>, vector<64x80xf32>
    %c0_1 = arith.constant 0 : index
    %c0_2 = arith.constant 0 : index
    %1 = vector.load %arg1[%c0_1, %c0_2] : memref<80x128xf32, #tpu.memory_space<vmem>>, vector<80x128xf32>
    %cst = arith.constant dense<0.000000e+00> : vector<64x128xf32>
    %2 = tpu.matmul %0, %1, %cst {dimension_numbers = #tpu.dot_dimension_numbers<[1], [0], [0], [1], [0, 0, 1, 1], [], []>} : vector<64x80xf32>, vector<80x128xf32>, vector<64x128xf32> -> vector<64x128xf32>
    %c0_3 = arith.constant 0 : index
    %c0_4 = arith.constant 0 : index
    %3 = vector.load %arg3[%c0_3, %c0_4] : memref<1x128xf32, #tpu.memory_space<vmem>>, vector<1x128xf32>
    %4 = vector.broadcast %3 : vector<1x128xf32> to vector<64x128xf32>
    %5 = arith.addf %2, %4 : vector<64x128xf32>
    %c0_5 = arith.constant 0 : index
    %c0_6 = arith.constant 0 : index
    %6 = vector.load %arg12[%c0_5, %c0_6] : memref<64x128xf32, #tpu.memory_space<vmem>>, vector<64x128xf32>
    tpu.vector_store %arg12[%c0_5, %c0_6], %5 {strides = array<i32>} : memref<64x128xf32, #tpu.memory_space<vmem>>, vector<64x128xf32>,
    %c0_7 = arith.constant 0 : index
    %c0_8 = arith.constant 0 : index
    %7 = vector.load %arg2[%c0_7, %c0_8] : memref<32x128xf32, #tpu.memory_space<vmem>>, vector<32x128xf32>
    %c0_9 = arith.constant 0 : index
    %c0_10 = arith.constant 0 : index
    %8 = vector.load %arg4[%c0_9, %c0_10] : memref<8x32xf32, #tpu.memory_space<vmem>>, vector<8x32xf32>
    %c0_11 = arith.constant 0 : index
    %c0_12 = arith.constant 0 : index
    %9 = vector.load %arg5[%c0_11, %c0_12] : memref<8x32xf32, #tpu.memory_space<vmem>>, vector<8x32xf32>
    %c0_13 = arith.constant 0 : index
    %c0_14 = arith.constant 0 : index
    %10 = vector.load %arg12[%c0_13, %c0_14] : memref<64x128xf32, #tpu.memory_space<vmem>>, vector<8x128xf32>
    %cst_15 = arith.constant dense<0.000000e+00> : vector<8x128xf32>
    %11 = tpu.matmul %8, %7, %cst_15 {dimension_numbers = #tpu.dot_dimension_numbers<[1], [0], [0], [1], [0, 0, 1, 1], [], []>} : vector<8x32xf32>, vector<32x128xf32>, vector<8x128xf32> -> vector<8x128xf32>
    %12 = arith.addf %10, %11 : vector<8x128xf32>
    %13 = vector.extract_strided_slice %12 {offsets = [0, 0], sizes = [8, 96], strides = [1, 1]} : vector<8x128xf32> to vector<8x96xf32>
    %14 = arith.negf %13 : vector<8x96xf32>
    %15 = math.exp %14 : vector<8x96xf32>
    %cst_16 = arith.constant 1.000000e+00 : f32
    %16 = vector.broadcast %cst_16 : f32 to vector<8x96xf32>
    %17 = arith.addf %16, %15 : vector<8x96xf32>
    %18 = arith.divf %16, %17 : vector<8x96xf32>
    %19 = vector.extract_strided_slice %12 {offsets = [0, 96], sizes = [8, 32], strides = [1, 1]} : vector<8x128xf32> to vector<8x32xf32>
    %20 = math.tanh %19 : vector<8x32xf32>
    %21 = vector.extract_strided_slice %18 {offsets = [0, 0], sizes = [8, 32], strides = [1, 1]} : vector<8x96xf32> to vector<8x32xf32>
    %22 = vector.extract_strided_slice %18 {offsets = [0, 32], sizes = [8, 32], strides = [1, 1]} : vector<8x96xf32> to vector<8x32xf32>
    %23 = vector.extract_strided_slice %18 {offsets = [0, 64], sizes = [8, 32], strides = [1, 1]} : vector<8x96xf32> to vector<8x32xf32>
    %24 = arith.mulf %22, %9 : vector<8x32xf32>
    %25 = arith.mulf %21, %20 : vector<8x32xf32>
    %26 = arith.addf %24, %25 : vector<8x32xf32>
    %27 = math.tanh %26 : vector<8x32xf32>
    %28 = arith.mulf %23, %27 : vector<8x32xf32>
    %29 = vector.extract_strided_slice %28 {offsets = [0, 0], sizes = [8, 16], strides = [1, 1]} : vector<8x32xf32> to vector<8x16xf32>
    %c0_17 = arith.constant 0 : index
    %c0_18 = arith.constant 0 : index
    %c0_19 = arith.constant 0 : index
    %30 = vector.load %arg13[%c0_17, %c0_18, %c0_19] : memref<8x8x16xf32, #tpu.memory_space<vmem>>, vector<1x8x16xf32>
    %31 = vector.shape_cast %30 : vector<1x8x16xf32> to vector<8x16xf32>
    %32 = vector.shape_cast %29 : vector<8x16xf32> to vector<1x8x16xf32>
    tpu.vector_store %arg13[%c0_17, %c0_18, %c0_19], %32 {strides = array<i32>} : memref<8x8x16xf32, #tpu.memory_space<vmem>>, vector<1x8x16xf32>,
    %33 = vector.extract_strided_slice %28 {offsets = [0, 16], sizes = [8, 16], strides = [1, 1]} : vector<8x32xf32> to vector<8x16xf32>
    %c7 = arith.constant 7 : index
    %c0_20 = arith.constant 0 : index
    %c0_21 = arith.constant 0 : index
    %34 = vector.load %arg14[%c7, %c0_20, %c0_21] : memref<8x8x16xf32, #tpu.memory_space<vmem>>, vector<1x8x16xf32>
    %35 = vector.shape_cast %34 : vector<1x8x16xf32> to vector<8x16xf32>
    %36 = vector.shape_cast %33 : vector<8x16xf32> to vector<1x8x16xf32>
    tpu.vector_store %arg14[%c7, %c0_20, %c0_21], %36 {strides = array<i32>} : memref<8x8x16xf32, #tpu.memory_space<vmem>>, vector<1x8x16xf32>,
    %c8 = arith.constant 8 : index
    %c0_22 = arith.constant 0 : index
    %37 = vector.load %arg12[%c8, %c0_22] : memref<64x128xf32, #tpu.memory_space<vmem>>, vector<8x128xf32>
    %cst_23 = arith.constant dense<0.000000e+00> : vector<8x128xf32>
    %38 = tpu.matmul %28, %7, %cst_23 {dimension_numbers = #tpu.dot_dimension_numbers<[1], [0], [0], [1], [0, 0, 1, 1], [], []>} : vector<8x32xf32>, vector<32x128xf32>, vector<8x128xf32> -> vector<8x128xf32>
    %39 = arith.addf %37, %38 : vector<8x128xf32>
    %40 = vector.extract_strided_slice %39 {offsets = [0, 0], sizes = [8, 96], strides = [1, 1]} : vector<8x128xf32> to vector<8x96xf32>
    %41 = arith.negf %40 : vector<8x96xf32>
    %42 = math.exp %41 : vector<8x96xf32>
    %cst_24 = arith.constant 1.000000e+00 : f32
    %43 = vector.broadcast %cst_24 : f32 to vector<8x96xf32>
    %44 = arith.addf %43, %42 : vector<8x96xf32>
    %45 = arith.divf %43, %44 : vector<8x96xf32>
    %46 = vector.extract_strided_slice %39 {offsets = [0, 96], sizes = [8, 32], strides = [1, 1]} : vector<8x128xf32> to vector<8x32xf32>
    %47 = math.tanh %46 : vector<8x32xf32>
    %48 = vector.extract_strided_slice %45 {offsets = [0, 0], sizes = [8, 32], strides = [1, 1]} : vector<8x96xf32> to vector<8x32xf32>
    %49 = vector.extract_strided_slice %45 {offsets = [0, 32], sizes = [8, 32], strides = [1, 1]} : vector<8x96xf32> to vector<8x32xf32>
    %50 = vector.extract_strided_slice %45 {offsets = [0, 64], sizes = [8, 32], strides = [1, 1]} : vector<8x96xf32> to vector<8x32xf32>
    %51 = arith.mulf %49, %26 : vector<8x32xf32>
    %52 = arith.mulf %48, %47 : vector<8x32xf32>
    %53 = arith.addf %51, %52 : vector<8x32xf32>
    %54 = math.tanh %53 : vector<8x32xf32>
    %55 = arith.mulf %50, %54 : vector<8x32xf32>
    %56 = vector.extract_strided_slice %55 {offsets = [0, 0], sizes = [8, 16], strides = [1, 1]} : vector<8x32xf32> to vector<8x16xf32>
    %c1 = arith.constant 1 : index
    %c0_25 = arith.constant 0 : index
    %c0_26 = arith.constant 0 : index
    %57 = vector.load %arg13[%c1, %c0_25, %c0_26] : memref<8x8x16xf32, #tpu.memory_space<vmem>>, vector<1x8x16xf32>
    %58 = vector.shape_cast %57 : vector<1x8x16xf32> to vector<8x16xf32>
    %59 = vector.shape_cast %56 : vector<8x16xf32> to vector<1x8x16xf32>
    tpu.vector_store %arg13[%c1, %c0_25, %c0_26], %59 {strides = array<i32>} : memref<8x8x16xf32, #tpu.memory_space<vmem>>, vector<1x8x16xf32>,
    %60 = vector.extract_strided_slice %55 {offsets = [0, 16], sizes = [8, 16], strides = [1, 1]} : vector<8x32xf32> to vector<8x16xf32>
    %c6 = arith.constant 6 : index
    %c0_27 = arith.constant 0 : index
    %c0_28 = arith.constant 0 : index
    %61 = vector.load %arg14[%c6, %c0_27, %c0_28] : memref<8x8x16xf32, #tpu.memory_space<vmem>>, vector<1x8x16xf32>
    %62 = vector.shape_cast %61 : vector<1x8x16xf32> to vector<8x16xf32>
    %63 = vector.shape_cast %60 : vector<8x16xf32> to vector<1x8x16xf32>
    tpu.vector_store %arg14[%c6, %c0_27, %c0_28], %63 {strides = array<i32>} : memref<8x8x16xf32, #tpu.memory_space<vmem>>, vector<1x8x16xf32>,
    %c16 = arith.constant 16 : index
    %c0_29 = arith.constant 0 : index
    %64 = vector.load %arg12[%c16, %c0_29] : memref<64x128xf32, #tpu.memory_space<vmem>>, vector<8x128xf32>
    %cst_30 = arith.constant dense<0.000000e+00> : vector<8x128xf32>
    %65 = tpu.matmul %55, %7, %cst_30 {dimension_numbers = #tpu.dot_dimension_numbers<[1], [0], [0], [1], [0, 0, 1, 1], [], []>} : vector<8x32xf32>, vector<32x128xf32>, vector<8x128xf32> -> vector<8x128xf32>
    %66 = arith.addf %64, %65 : vector<8x128xf32>
    %67 = vector.extract_strided_slice %66 {offsets = [0, 0], sizes = [8, 96], strides = [1, 1]} : vector<8x128xf32> to vector<8x96xf32>
    %68 = arith.negf %67 : vector<8x96xf32>
    %69 = math.exp %68 : vector<8x96xf32>
    %cst_31 = arith.constant 1.000000e+00 : f32
    %70 = vector.broadcast %cst_31 : f32 to vector<8x96xf32>
    %71 = arith.addf %70, %69 : vector<8x96xf32>
    %72 = arith.divf %70, %71 : vector<8x96xf32>
    %73 = vector.extract_strided_slice %66 {offsets = [0, 96], sizes = [8, 32], strides = [1, 1]} : vector<8x128xf32> to vector<8x32xf32>
    %74 = math.tanh %73 : vector<8x32xf32>
    %75 = vector.extract_strided_slice %72 {offsets = [0, 0], sizes = [8, 32], strides = [1, 1]} : vector<8x96xf32> to vector<8x32xf32>
    %76 = vector.extract_strided_slice %72 {offsets = [0, 32], sizes = [8, 32], strides = [1, 1]} : vector<8x96xf32> to vector<8x32xf32>
    %77 = vector.extract_strided_slice %72 {offsets = [0, 64], sizes = [8, 32], strides = [1, 1]} : vector<8x96xf32> to vector<8x32xf32>
    %78 = arith.mulf %76, %53 : vector<8x32xf32>
    %79 = arith.mulf %75, %74 : vector<8x32xf32>
    %80 = arith.addf %78, %79 : vector<8x32xf32>
    %81 = math.tanh %80 : vector<8x32xf32>
    %82 = arith.mulf %77, %81 : vector<8x32xf32>
    %83 = vector.extract_strided_slice %82 {offsets = [0, 0], sizes = [8, 16], strides = [1, 1]} : vector<8x32xf32> to vector<8x16xf32>
    %c2 = arith.constant 2 : index
    %c0_32 = arith.constant 0 : index
    %c0_33 = arith.constant 0 : index
    %84 = vector.load %arg13[%c2, %c0_32, %c0_33] : memref<8x8x16xf32, #tpu.memory_space<vmem>>, vector<1x8x16xf32>
    %85 = vector.shape_cast %84 : vector<1x8x16xf32> to vector<8x16xf32>
    %86 = vector.shape_cast %83 : vector<8x16xf32> to vector<1x8x16xf32>
    tpu.vector_store %arg13[%c2, %c0_32, %c0_33], %86 {strides = array<i32>} : memref<8x8x16xf32, #tpu.memory_space<vmem>>, vector<1x8x16xf32>,
    %87 = vector.extract_strided_slice %82 {offsets = [0, 16], sizes = [8, 16], strides = [1, 1]} : vector<8x32xf32> to vector<8x16xf32>
    %c5 = arith.constant 5 : index
    %c0_34 = arith.constant 0 : index
    %c0_35 = arith.constant 0 : index
    %88 = vector.load %arg14[%c5, %c0_34, %c0_35] : memref<8x8x16xf32, #tpu.memory_space<vmem>>, vector<1x8x16xf32>
    %89 = vector.shape_cast %88 : vector<1x8x16xf32> to vector<8x16xf32>
    %90 = vector.shape_cast %87 : vector<8x16xf32> to vector<1x8x16xf32>
    tpu.vector_store %arg14[%c5, %c0_34, %c0_35], %90 {strides = array<i32>} : memref<8x8x16xf32, #tpu.memory_space<vmem>>, vector<1x8x16xf32>,
    %c24 = arith.constant 24 : index
    %c0_36 = arith.constant 0 : index
    %91 = vector.load %arg12[%c24, %c0_36] : memref<64x128xf32, #tpu.memory_space<vmem>>, vector<8x128xf32>
    %cst_37 = arith.constant dense<0.000000e+00> : vector<8x128xf32>
    %92 = tpu.matmul %82, %7, %cst_37 {dimension_numbers = #tpu.dot_dimension_numbers<[1], [0], [0], [1], [0, 0, 1, 1], [], []>} : vector<8x32xf32>, vector<32x128xf32>, vector<8x128xf32> -> vector<8x128xf32>
    %93 = arith.addf %91, %92 : vector<8x128xf32>
    %94 = vector.extract_strided_slice %93 {offsets = [0, 0], sizes = [8, 96], strides = [1, 1]} : vector<8x128xf32> to vector<8x96xf32>
    %95 = arith.negf %94 : vector<8x96xf32>
    %96 = math.exp %95 : vector<8x96xf32>
    %cst_38 = arith.constant 1.000000e+00 : f32
    %97 = vector.broadcast %cst_38 : f32 to vector<8x96xf32>
    %98 = arith.addf %97, %96 : vector<8x96xf32>
    %99 = arith.divf %97, %98 : vector<8x96xf32>
    %100 = vector.extract_strided_slice %93 {offsets = [0, 96], sizes = [8, 32], strides = [1, 1]} : vector<8x128xf32> to vector<8x32xf32>
    %101 = math.tanh %100 : vector<8x32xf32>
    %102 = vector.extract_strided_slice %99 {offsets = [0, 0], sizes = [8, 32], strides = [1, 1]} : vector<8x96xf32> to vector<8x32xf32>
    %103 = vector.extract_strided_slice %99 {offsets = [0, 32], sizes = [8, 32], strides = [1, 1]} : vector<8x96xf32> to vector<8x32xf32>
    %104 = vector.extract_strided_slice %99 {offsets = [0, 64], sizes = [8, 32], strides = [1, 1]} : vector<8x96xf32> to vector<8x32xf32>
    %105 = arith.mulf %103, %80 : vector<8x32xf32>
    %106 = arith.mulf %102, %101 : vector<8x32xf32>
    %107 = arith.addf %105, %106 : vector<8x32xf32>
    %108 = math.tanh %107 : vector<8x32xf32>
    %109 = arith.mulf %104, %108 : vector<8x32xf32>
    %110 = vector.extract_strided_slice %109 {offsets = [0, 0], sizes = [8, 16], strides = [1, 1]} : vector<8x32xf32> to vector<8x16xf32>
    %c3 = arith.constant 3 : index
    %c0_39 = arith.constant 0 : index
    %c0_40 = arith.constant 0 : index
    %111 = vector.load %arg13[%c3, %c0_39, %c0_40] : memref<8x8x16xf32, #tpu.memory_space<vmem>>, vector<1x8x16xf32>
    %112 = vector.shape_cast %111 : vector<1x8x16xf32> to vector<8x16xf32>
    %113 = vector.shape_cast %110 : vector<8x16xf32> to vector<1x8x16xf32>
    tpu.vector_store %arg13[%c3, %c0_39, %c0_40], %113 {strides = array<i32>} : memref<8x8x16xf32, #tpu.memory_space<vmem>>, vector<1x8x16xf32>,
    %114 = vector.extract_strided_slice %109 {offsets = [0, 16], sizes = [8, 16], strides = [1, 1]} : vector<8x32xf32> to vector<8x16xf32>
    %c4 = arith.constant 4 : index
    %c0_41 = arith.constant 0 : index
    %c0_42 = arith.constant 0 : index
    %115 = vector.load %arg14[%c4, %c0_41, %c0_42] : memref<8x8x16xf32, #tpu.memory_space<vmem>>, vector<1x8x16xf32>
    %116 = vector.shape_cast %115 : vector<1x8x16xf32> to vector<8x16xf32>
    %117 = vector.shape_cast %114 : vector<8x16xf32> to vector<1x8x16xf32>
    tpu.vector_store %arg14[%c4, %c0_41, %c0_42], %117 {strides = array<i32>} : memref<8x8x16xf32, #tpu.memory_space<vmem>>, vector<1x8x16xf32>,
    %c32 = arith.constant 32 : index
    %c0_43 = arith.constant 0 : index
    %118 = vector.load %arg12[%c32, %c0_43] : memref<64x128xf32, #tpu.memory_space<vmem>>, vector<8x128xf32>
    %cst_44 = arith.constant dense<0.000000e+00> : vector<8x128xf32>
    %119 = tpu.matmul %109, %7, %cst_44 {dimension_numbers = #tpu.dot_dimension_numbers<[1], [0], [0], [1], [0, 0, 1, 1], [], []>} : vector<8x32xf32>, vector<32x128xf32>, vector<8x128xf32> -> vector<8x128xf32>
    %120 = arith.addf %118, %119 : vector<8x128xf32>
    %121 = vector.extract_strided_slice %120 {offsets = [0, 0], sizes = [8, 96], strides = [1, 1]} : vector<8x128xf32> to vector<8x96xf32>
    %122 = arith.negf %121 : vector<8x96xf32>
    %123 = math.exp %122 : vector<8x96xf32>
    %cst_45 = arith.constant 1.000000e+00 : f32
    %124 = vector.broadcast %cst_45 : f32 to vector<8x96xf32>
    %125 = arith.addf %124, %123 : vector<8x96xf32>
    %126 = arith.divf %124, %125 : vector<8x96xf32>
    %127 = vector.extract_strided_slice %120 {offsets = [0, 96], sizes = [8, 32], strides = [1, 1]} : vector<8x128xf32> to vector<8x32xf32>
    %128 = math.tanh %127 : vector<8x32xf32>
    %129 = vector.extract_strided_slice %126 {offsets = [0, 0], sizes = [8, 32], strides = [1, 1]} : vector<8x96xf32> to vector<8x32xf32>
    %130 = vector.extract_strided_slice %126 {offsets = [0, 32], sizes = [8, 32], strides = [1, 1]} : vector<8x96xf32> to vector<8x32xf32>
    %131 = vector.extract_strided_slice %126 {offsets = [0, 64], sizes = [8, 32], strides = [1, 1]} : vector<8x96xf32> to vector<8x32xf32>
    %132 = arith.mulf %130, %107 : vector<8x32xf32>
    %133 = arith.mulf %129, %128 : vector<8x32xf32>
    %134 = arith.addf %132, %133 : vector<8x32xf32>
    %135 = math.tanh %134 : vector<8x32xf32>
    %136 = arith.mulf %131, %135 : vector<8x32xf32>
    %137 = vector.extract_strided_slice %136 {offsets = [0, 0], sizes = [8, 16], strides = [1, 1]} : vector<8x32xf32> to vector<8x16xf32>
    %c4_46 = arith.constant 4 : index
    %c0_47 = arith.constant 0 : index
    %c0_48 = arith.constant 0 : index
    %138 = vector.load %arg13[%c4_46, %c0_47, %c0_48] : memref<8x8x16xf32, #tpu.memory_space<vmem>>, vector<1x8x16xf32>
    %139 = vector.shape_cast %138 : vector<1x8x16xf32> to vector<8x16xf32>
    %140 = vector.shape_cast %137 : vector<8x16xf32> to vector<1x8x16xf32>
    tpu.vector_store %arg13[%c4_46, %c0_47, %c0_48], %140 {strides = array<i32>} : memref<8x8x16xf32, #tpu.memory_space<vmem>>, vector<1x8x16xf32>,
    %141 = vector.extract_strided_slice %136 {offsets = [0, 16], sizes = [8, 16], strides = [1, 1]} : vector<8x32xf32> to vector<8x16xf32>
    %c3_49 = arith.constant 3 : index
    %c0_50 = arith.constant 0 : index
    %c0_51 = arith.constant 0 : index
    %142 = vector.load %arg14[%c3_49, %c0_50, %c0_51] : memref<8x8x16xf32, #tpu.memory_space<vmem>>, vector<1x8x16xf32>
    %143 = vector.shape_cast %142 : vector<1x8x16xf32> to vector<8x16xf32>
    %144 = vector.shape_cast %141 : vector<8x16xf32> to vector<1x8x16xf32>
    tpu.vector_store %arg14[%c3_49, %c0_50, %c0_51], %144 {strides = array<i32>} : memref<8x8x16xf32, #tpu.memory_space<vmem>>, vector<1x8x16xf32>,
    %c40 = arith.constant 40 : index
    %c0_52 = arith.constant 0 : index
    %145 = vector.load %arg12[%c40, %c0_52] : memref<64x128xf32, #tpu.memory_space<vmem>>, vector<8x128xf32>
    %cst_53 = arith.constant dense<0.000000e+00> : vector<8x128xf32>
    %146 = tpu.matmul %136, %7, %cst_53 {dimension_numbers = #tpu.dot_dimension_numbers<[1], [0], [0], [1], [0, 0, 1, 1], [], []>} : vector<8x32xf32>, vector<32x128xf32>, vector<8x128xf32> -> vector<8x128xf32>
    %147 = arith.addf %145, %146 : vector<8x128xf32>
    %148 = vector.extract_strided_slice %147 {offsets = [0, 0], sizes = [8, 96], strides = [1, 1]} : vector<8x128xf32> to vector<8x96xf32>
    %149 = arith.negf %148 : vector<8x96xf32>
    %150 = math.exp %149 : vector<8x96xf32>
    %cst_54 = arith.constant 1.000000e+00 : f32
    %151 = vector.broadcast %cst_54 : f32 to vector<8x96xf32>
    %152 = arith.addf %151, %150 : vector<8x96xf32>
    %153 = arith.divf %151, %152 : vector<8x96xf32>
    %154 = vector.extract_strided_slice %147 {offsets = [0, 96], sizes = [8, 32], strides = [1, 1]} : vector<8x128xf32> to vector<8x32xf32>
    %155 = math.tanh %154 : vector<8x32xf32>
    %156 = vector.extract_strided_slice %153 {offsets = [0, 0], sizes = [8, 32], strides = [1, 1]} : vector<8x96xf32> to vector<8x32xf32>
    %157 = vector.extract_strided_slice %153 {offsets = [0, 32], sizes = [8, 32], strides = [1, 1]} : vector<8x96xf32> to vector<8x32xf32>
    %158 = vector.extract_strided_slice %153 {offsets = [0, 64], sizes = [8, 32], strides = [1, 1]} : vector<8x96xf32> to vector<8x32xf32>
    %159 = arith.mulf %157, %134 : vector<8x32xf32>
    %160 = arith.mulf %156, %155 : vector<8x32xf32>
    %161 = arith.addf %159, %160 : vector<8x32xf32>
    %162 = math.tanh %161 : vector<8x32xf32>
    %163 = arith.mulf %158, %162 : vector<8x32xf32>
    %164 = vector.extract_strided_slice %163 {offsets = [0, 0], sizes = [8, 16], strides = [1, 1]} : vector<8x32xf32> to vector<8x16xf32>
    %c5_55 = arith.constant 5 : index
    %c0_56 = arith.constant 0 : index
    %c0_57 = arith.constant 0 : index
    %165 = vector.load %arg13[%c5_55, %c0_56, %c0_57] : memref<8x8x16xf32, #tpu.memory_space<vmem>>, vector<1x8x16xf32>
    %166 = vector.shape_cast %165 : vector<1x8x16xf32> to vector<8x16xf32>
    %167 = vector.shape_cast %164 : vector<8x16xf32> to vector<1x8x16xf32>
    tpu.vector_store %arg13[%c5_55, %c0_56, %c0_57], %167 {strides = array<i32>} : memref<8x8x16xf32, #tpu.memory_space<vmem>>, vector<1x8x16xf32>,
    %168 = vector.extract_strided_slice %163 {offsets = [0, 16], sizes = [8, 16], strides = [1, 1]} : vector<8x32xf32> to vector<8x16xf32>
    %c2_58 = arith.constant 2 : index
    %c0_59 = arith.constant 0 : index
    %c0_60 = arith.constant 0 : index
    %169 = vector.load %arg14[%c2_58, %c0_59, %c0_60] : memref<8x8x16xf32, #tpu.memory_space<vmem>>, vector<1x8x16xf32>
    %170 = vector.shape_cast %169 : vector<1x8x16xf32> to vector<8x16xf32>
    %171 = vector.shape_cast %168 : vector<8x16xf32> to vector<1x8x16xf32>
    tpu.vector_store %arg14[%c2_58, %c0_59, %c0_60], %171 {strides = array<i32>} : memref<8x8x16xf32, #tpu.memory_space<vmem>>, vector<1x8x16xf32>,
    %c48 = arith.constant 48 : index
    %c0_61 = arith.constant 0 : index
    %172 = vector.load %arg12[%c48, %c0_61] : memref<64x128xf32, #tpu.memory_space<vmem>>, vector<8x128xf32>
    %cst_62 = arith.constant dense<0.000000e+00> : vector<8x128xf32>
    %173 = tpu.matmul %163, %7, %cst_62 {dimension_numbers = #tpu.dot_dimension_numbers<[1], [0], [0], [1], [0, 0, 1, 1], [], []>} : vector<8x32xf32>, vector<32x128xf32>, vector<8x128xf32> -> vector<8x128xf32>
    %174 = arith.addf %172, %173 : vector<8x128xf32>
    %175 = vector.extract_strided_slice %174 {offsets = [0, 0], sizes = [8, 96], strides = [1, 1]} : vector<8x128xf32> to vector<8x96xf32>
    %176 = arith.negf %175 : vector<8x96xf32>
    %177 = math.exp %176 : vector<8x96xf32>
    %cst_63 = arith.constant 1.000000e+00 : f32
    %178 = vector.broadcast %cst_63 : f32 to vector<8x96xf32>
    %179 = arith.addf %178, %177 : vector<8x96xf32>
    %180 = arith.divf %178, %179 : vector<8x96xf32>
    %181 = vector.extract_strided_slice %174 {offsets = [0, 96], sizes = [8, 32], strides = [1, 1]} : vector<8x128xf32> to vector<8x32xf32>
    %182 = math.tanh %181 : vector<8x32xf32>
    %183 = vector.extract_strided_slice %180 {offsets = [0, 0], sizes = [8, 32], strides = [1, 1]} : vector<8x96xf32> to vector<8x32xf32>
    %184 = vector.extract_strided_slice %180 {offsets = [0, 32], sizes = [8, 32], strides = [1, 1]} : vector<8x96xf32> to vector<8x32xf32>
    %185 = vector.extract_strided_slice %180 {offsets = [0, 64], sizes = [8, 32], strides = [1, 1]} : vector<8x96xf32> to vector<8x32xf32>
    %186 = arith.mulf %184, %161 : vector<8x32xf32>
    %187 = arith.mulf %183, %182 : vector<8x32xf32>
    %188 = arith.addf %186, %187 : vector<8x32xf32>
    %189 = math.tanh %188 : vector<8x32xf32>
    %190 = arith.mulf %185, %189 : vector<8x32xf32>
    %191 = vector.extract_strided_slice %190 {offsets = [0, 0], sizes = [8, 16], strides = [1, 1]} : vector<8x32xf32> to vector<8x16xf32>
    %c6_64 = arith.constant 6 : index
    %c0_65 = arith.constant 0 : index
    %c0_66 = arith.constant 0 : index
    %192 = vector.load %arg13[%c6_64, %c0_65, %c0_66] : memref<8x8x16xf32, #tpu.memory_space<vmem>>, vector<1x8x16xf32>
    %193 = vector.shape_cast %192 : vector<1x8x16xf32> to vector<8x16xf32>
    %194 = vector.shape_cast %191 : vector<8x16xf32> to vector<1x8x16xf32>
    tpu.vector_store %arg13[%c6_64, %c0_65, %c0_66], %194 {strides = array<i32>} : memref<8x8x16xf32, #tpu.memory_space<vmem>>, vector<1x8x16xf32>,
    %195 = vector.extract_strided_slice %190 {offsets = [0, 16], sizes = [8, 16], strides = [1, 1]} : vector<8x32xf32> to vector<8x16xf32>
    %c1_67 = arith.constant 1 : index
    %c0_68 = arith.constant 0 : index
    %c0_69 = arith.constant 0 : index
    %196 = vector.load %arg14[%c1_67, %c0_68, %c0_69] : memref<8x8x16xf32, #tpu.memory_space<vmem>>, vector<1x8x16xf32>
    %197 = vector.shape_cast %196 : vector<1x8x16xf32> to vector<8x16xf32>
    %198 = vector.shape_cast %195 : vector<8x16xf32> to vector<1x8x16xf32>
    tpu.vector_store %arg14[%c1_67, %c0_68, %c0_69], %198 {strides = array<i32>} : memref<8x8x16xf32, #tpu.memory_space<vmem>>, vector<1x8x16xf32>,
    %c56 = arith.constant 56 : index
    %c0_70 = arith.constant 0 : index
    %199 = vector.load %arg12[%c56, %c0_70] : memref<64x128xf32, #tpu.memory_space<vmem>>, vector<8x128xf32>
    %cst_71 = arith.constant dense<0.000000e+00> : vector<8x128xf32>
    %200 = tpu.matmul %190, %7, %cst_71 {dimension_numbers = #tpu.dot_dimension_numbers<[1], [0], [0], [1], [0, 0, 1, 1], [], []>} : vector<8x32xf32>, vector<32x128xf32>, vector<8x128xf32> -> vector<8x128xf32>
    %201 = arith.addf %199, %200 : vector<8x128xf32>
    %202 = vector.extract_strided_slice %201 {offsets = [0, 0], sizes = [8, 96], strides = [1, 1]} : vector<8x128xf32> to vector<8x96xf32>
    %203 = arith.negf %202 : vector<8x96xf32>
    %204 = math.exp %203 : vector<8x96xf32>
    %cst_72 = arith.constant 1.000000e+00 : f32
    %205 = vector.broadcast %cst_72 : f32 to vector<8x96xf32>
    %206 = arith.addf %205, %204 : vector<8x96xf32>
    %207 = arith.divf %205, %206 : vector<8x96xf32>
    %208 = vector.extract_strided_slice %201 {offsets = [0, 96], sizes = [8, 32], strides = [1, 1]} : vector<8x128xf32> to vector<8x32xf32>
    %209 = math.tanh %208 : vector<8x32xf32>
    %210 = vector.extract_strided_slice %207 {offsets = [0, 0], sizes = [8, 32], strides = [1, 1]} : vector<8x96xf32> to vector<8x32xf32>
    %211 = vector.extract_strided_slice %207 {offsets = [0, 32], sizes = [8, 32], strides = [1, 1]} : vector<8x96xf32> to vector<8x32xf32>
    %212 = vector.extract_strided_slice %207 {offsets = [0, 64], sizes = [8, 32], strides = [1, 1]} : vector<8x96xf32> to vector<8x32xf32>
    %213 = arith.mulf %211, %188 : vector<8x32xf32>
    %214 = arith.mulf %210, %209 : vector<8x32xf32>
    %215 = arith.addf %213, %214 : vector<8x32xf32>
    %216 = math.tanh %215 : vector<8x32xf32>
    %217 = arith.mulf %212, %216 : vector<8x32xf32>
    %218 = vector.extract_strided_slice %217 {offsets = [0, 0], sizes = [8, 16], strides = [1, 1]} : vector<8x32xf32> to vector<8x16xf32>
    %c7_73 = arith.constant 7 : index
    %c0_74 = arith.constant 0 : index
    %c0_75 = arith.constant 0 : index
    %219 = vector.load %arg13[%c7_73, %c0_74, %c0_75] : memref<8x8x16xf32, #tpu.memory_space<vmem>>, vector<1x8x16xf32>
    %220 = vector.shape_cast %219 : vector<1x8x16xf32> to vector<8x16xf32>
    %221 = vector.shape_cast %218 : vector<8x16xf32> to vector<1x8x16xf32>
    tpu.vector_store %arg13[%c7_73, %c0_74, %c0_75], %221 {strides = array<i32>} : memref<8x8x16xf32, #tpu.memory_space<vmem>>, vector<1x8x16xf32>,
    %222 = vector.extract_strided_slice %217 {offsets = [0, 16], sizes = [8, 16], strides = [1, 1]} : vector<8x32xf32> to vector<8x16xf32>
    %c0_76 = arith.constant 0 : index
    %c0_77 = arith.constant 0 : index
    %c0_78 = arith.constant 0 : index
    %223 = vector.load %arg14[%c0_76, %c0_77, %c0_78] : memref<8x8x16xf32, #tpu.memory_space<vmem>>, vector<1x8x16xf32>
    %224 = vector.shape_cast %223 : vector<1x8x16xf32> to vector<8x16xf32>
    %225 = vector.shape_cast %222 : vector<8x16xf32> to vector<1x8x16xf32>
    tpu.vector_store %arg14[%c0_76, %c0_77, %c0_78], %225 {strides = array<i32>} : memref<8x8x16xf32, #tpu.memory_space<vmem>>, vector<1x8x16xf32>,
    %c0_79 = arith.constant 0 : index
    %c0_80 = arith.constant 0 : index
    %c0_81 = arith.constant 0 : index
    %226 = vector.load %arg13[%c0_79, %c0_80, %c0_81] : memref<8x8x16xf32, #tpu.memory_space<vmem>>, vector<8x8x16xf32>
    %c0_82 = arith.constant 0 : index
    %c0_83 = arith.constant 0 : index
    %c0_84 = arith.constant 0 : index
    %227 = vector.load %arg14[%c0_82, %c0_83, %c0_84] : memref<8x8x16xf32, #tpu.memory_space<vmem>>, vector<8x8x16xf32>
    %228 = math.tanh %226 : vector<8x8x16xf32>
    %c0_85 = arith.constant 0 : index
    %c0_86 = arith.constant 0 : index
    %229 = vector.load %arg6[%c0_85, %c0_86] : memref<8x16xf32, #tpu.memory_space<vmem>>, vector<8x16xf32>
    %230 = vector.shape_cast %229 : vector<8x16xf32> to vector<1x8x16xf32>
    %231 = vector.broadcast %230 : vector<1x8x16xf32> to vector<8x8x16xf32>
    %232 = arith.mulf %228, %231 : vector<8x8x16xf32>
    %cst_87 = arith.constant dense<0.000000e+00> : vector<8x8xf32>
    %233 = vector.multi_reduction <add>, %232, %cst_87 [2] : vector<8x8x16xf32> to vector<8x8xf32>
    %234 = vector.shape_cast %233 : vector<8x8xf32> to vector<8x8x1xf32>
    %235 = math.tanh %227 : vector<8x8x16xf32>
    %c0_88 = arith.constant 0 : index
    %c0_89 = arith.constant 0 : index
    %236 = vector.load %arg7[%c0_88, %c0_89] : memref<8x16xf32, #tpu.memory_space<vmem>>, vector<8x16xf32>
    %237 = vector.shape_cast %236 : vector<8x16xf32> to vector<1x8x16xf32>
    %238 = vector.broadcast %237 : vector<1x8x16xf32> to vector<8x8x16xf32>
    %239 = arith.mulf %235, %238 : vector<8x8x16xf32>
    %cst_90 = arith.constant dense<0.000000e+00> : vector<8x8xf32>
    %240 = vector.multi_reduction <add>, %239, %cst_90 [2] : vector<8x8x16xf32> to vector<8x8xf32>
    %241 = vector.shape_cast %240 : vector<8x8xf32> to vector<8x8x1xf32>
    %242 = arith.addf %234, %241 : vector<8x8x1xf32>
    %cst_91 = arith.constant dense<0xFF800000> : vector<8x1xf32>
    %243 = vector.multi_reduction <maximumf>, %242, %cst_91 [0] : vector<8x8x1xf32> to vector<8x1xf32>
    %244 = vector.shape_cast %243 : vector<8x1xf32> to vector<1x8x1xf32>
    %245 = vector.broadcast %244 : vector<1x8x1xf32> to vector<8x8x1xf32>
    %246 = arith.subf %242, %245 : vector<8x8x1xf32>
    %247 = math.exp %246 : vector<8x8x1xf32>
    %cst_92 = arith.constant dense<0.000000e+00> : vector<8x1xf32>
    %248 = vector.multi_reduction <add>, %247, %cst_92 [0] : vector<8x8x1xf32> to vector<8x1xf32>
    %249 = vector.shape_cast %248 : vector<8x1xf32> to vector<1x8x1xf32>
    %250 = vector.broadcast %249 : vector<1x8x1xf32> to vector<8x8x1xf32>
    %251 = arith.divf %247, %250 : vector<8x8x1xf32>
    %252 = vector.broadcast %251 : vector<8x8x1xf32> to vector<8x8x16xf32>
    %253 = arith.mulf %226, %252 : vector<8x8x16xf32>
    %cst_93 = arith.constant dense<0.000000e+00> : vector<8x16xf32>
    %254 = vector.multi_reduction <add>, %253, %cst_93 [0] : vector<8x8x16xf32> to vector<8x16xf32>
    %255 = vector.broadcast %251 : vector<8x8x1xf32> to vector<8x8x16xf32>
    %256 = arith.mulf %227, %255 : vector<8x8x16xf32>
    %cst_94 = arith.constant dense<0.000000e+00> : vector<8x16xf32>
    %257 = vector.multi_reduction <add>, %256, %cst_94 [0] : vector<8x8x16xf32> to vector<8x16xf32>
    %258 = math.tanh %254 : vector<8x16xf32>
    %c0_95 = arith.constant 0 : index
    %c0_96 = arith.constant 0 : index
    %259 = vector.load %arg8[%c0_95, %c0_96] : memref<16x8xf32, #tpu.memory_space<vmem>>, vector<16x8xf32>
    %cst_97 = arith.constant dense<0.000000e+00> : vector<8x8xf32>
    %260 = tpu.matmul %258, %259, %cst_97 {dimension_numbers = #tpu.dot_dimension_numbers<[1], [0], [0], [1], [0, 0, 1, 1], [], []>} : vector<8x16xf32>, vector<16x8xf32>, vector<8x8xf32> -> vector<8x8xf32>
    %261 = math.tanh %257 : vector<8x16xf32>
    %c0_98 = arith.constant 0 : index
    %c0_99 = arith.constant 0 : index
    %262 = vector.load %arg9[%c0_98, %c0_99] : memref<16x8xf32, #tpu.memory_space<vmem>>, vector<16x8xf32>
    %cst_100 = arith.constant dense<0.000000e+00> : vector<8x8xf32>
    %263 = tpu.matmul %261, %262, %cst_100 {dimension_numbers = #tpu.dot_dimension_numbers<[1], [0], [0], [1], [0, 0, 1, 1], [], []>} : vector<8x16xf32>, vector<16x8xf32>, vector<8x8xf32> -> vector<8x8xf32>
    %264 = arith.addf %260, %263 : vector<8x8xf32>
    %c0_101 = arith.constant 0 : index
    %c0_102 = arith.constant 0 : index
    %265 = vector.load %arg10[%c0_101, %c0_102] : memref<8x8xf32, #tpu.memory_space<vmem>>, vector<8x8xf32>
    %266 = arith.addf %264, %265 : vector<8x8xf32>
    %cst_103 = arith.constant dense<0xFF800000> : vector<8xf32>
    %267 = vector.multi_reduction <maximumf>, %266, %cst_103 [1] : vector<8x8xf32> to vector<8xf32>
    %268 = vector.shape_cast %267 : vector<8xf32> to vector<8x1xf32>
    %269 = vector.broadcast %268 : vector<8x1xf32> to vector<8x8xf32>
    %270 = arith.subf %266, %269 : vector<8x8xf32>
    %271 = math.exp %270 : vector<8x8xf32>
    %cst_104 = arith.constant dense<0.000000e+00> : vector<8xf32>
    %272 = vector.multi_reduction <add>, %271, %cst_104 [1] : vector<8x8xf32> to vector<8xf32>
    %273 = vector.shape_cast %272 : vector<8xf32> to vector<8x1xf32>
    %274 = vector.broadcast %273 : vector<8x1xf32> to vector<8x8xf32>
    %275 = arith.divf %271, %274 : vector<8x8xf32>
    %c0_105 = arith.constant 0 : index
    %c0_106 = arith.constant 0 : index
    %276 = vector.load %arg11[%c0_105, %c0_106] : memref<8x8xf32, #tpu.memory_space<vmem>>, vector<8x8xf32>
    tpu.vector_store %arg11[%c0_105, %c0_106], %275 {strides = array<i32>} : memref<8x8xf32, #tpu.memory_space<vmem>>, vector<8x8xf32>,
    return
  }
}

</mosaic_0001>

<bundles_post_ra>
// kernel: tpu_custom_call.1
= control target key start
LH: loop header
LB: loop body
LE: loop exit
PB: predicated region body
PF: predicated region fallthrough
CT: control target
= control target key end

     0   :  { %16 = vsyncpa [#allocation6], 0  ;;  %s2491_s0 = inlined_call_operand.hbm [shape: f32[64,80], index: 0, kind: input, shape index: {}]   ;;  %s2492_s1 = inlined_call_operand.hbm [shape: f32[80,128], index: 1, kind: input, shape index: {}]   ;;  %s2493_s2 = inlined_call_operand.vmem [shape: f32[32,128], index: 2, kind: input, shape index: {}]   ;;  %s2494_s3 = inlined_call_operand.hbm [shape: f32[1,128], index: 3, kind: input, shape index: {}]   ;;  %s2495_s4 = inlined_call_operand.vmem [shape: f32[8,32], index: 4, kind: input, shape index: {}]   ;;  %s2496_s5 = inlined_call_operand.hbm [shape: f32[8,32], index: 5, kind: input, shape index: {}]   ;;  %s2497_s6 = inlined_call_operand.hbm [shape: f32[8,16], index: 6, kind: input, shape index: {}]   ;;  %s2498_s7 = inlined_call_operand.hbm [shape: f32[8,16], index: 7, kind: input, shape index: {}]   ;;  %s2499_s8 = inlined_call_operand.vmem [shape: f32[16,8], index: 8, kind: input, shape index: {}]   ;;  %s2500_s9 = inlined_call_operand.vmem [shape: f32[16,8], index: 9, kind: input, shape index: {}]   ;;  %s2501_s10 = inlined_call_operand.vmem [shape: f32[8,8], index: 10, kind: input, shape index: {}]   ;;  %s2502_s11 = inlined_call_operand.hbm [shape: f32[8,8], index: 11, kind: output, shape index: {}]  }
   0x1   :  { %17 = vsyncpa [#allocation9], 0 }
   0x2   :  { %18 = vsyncpa [#allocation12], 0 }
   0x3   :  { %19 = vsyncpa [#allocation15], 0 }
   0x4   :  { %20 = vsyncpa [#allocation7], 0  ;;  %s2054_s17 = smov [#allocation8]   ;;  %s2055_s19 = smov [#allocation11]  }
   0x5   :  { %s38_s18 = sshll.u32 %s2054_s17, 4  ;;  %s65_s20 = sshll.u32 %s2055_s19, 4  ;;  %s39_s18 = int_to_ptr.vmem [resolvable:$true] %s38_s18  ;;  %s66_s20 = int_to_ptr.vmem [resolvable:$true] %s65_s20 }
   0x6   :  { %s1912_s21 = scalar_lea.vmem %s39_s18, 1280  ;;  %p1917_p1 = scmp.lt.s32.totalorder %s39_s18, %s39_s18 }
   0x7   :  { %p1913_p0 = scmp.ne.s32.totalorder %s39_s18, %s1912_s21  ;;  %p1918_p2 = scmp.lt.s32.totalorder %s1912_s21, %s1912_s21 }
   0x9   :  { %p1919_p3 = por %p1918_p2, %p1917_p1 }
   0xb   :  { %p1920_p4 = pnand %p1919_p3, %p1913_p0 }
   0xd   :  { %1923 = shalt.err (!%p1920_p4)
}
   0xe   :  { %s2056_s22 = smov 128   ;;  %s2057_s23 = smov 8  }
   0xf   :  { %44 = dma.hbm_to_vmem [thread:$0]  %s2492_s1, 1280, %s39_s18, [#allocation9], %s2056_s22, %s2056_s22, %s2057_s23  }
  0x10   :  { %s1932_s26 = scalar_lea.vmem %s66_s20, 128  ;;  %p1937_p6 = scmp.lt.s32.totalorder %s66_s20, %s66_s20 }
  0x11   :  { %p1933_p5 = scmp.ne.s32.totalorder %s66_s20, %s1932_s26  ;;  %p1938_p7 = scmp.lt.s32.totalorder %s1932_s26, %s1932_s26 }
  0x13   :  { %p1939_p8 = por %p1938_p7, %p1937_p6 }
  0x15   :  { %p1940_p9 = pnand %p1939_p8, %p1933_p5 }
  0x17   :  { %1943 = shalt.err (!%p1940_p9)
}
  0x18   :  { %68 = dma.hbm_to_vmem [thread:$0]  %s2496_s5, 128, %s66_s20, [#allocation12]  }
  0x19   :  { %s2058_s29 = smov [#allocation5]   ;;  %s2059_s12 = smov [#allocation10]  }
  0x1a   :  { %s26_s30 = sshll.u32 %s2058_s29, 4  ;;  %s53_s13 = sshll.u32 %s2059_s12, 4  ;;  %s27_s30 = int_to_ptr.vmem [resolvable:$true] %s26_s30  ;;  %s54_s13 = int_to_ptr.vmem [resolvable:$true] %s53_s13 }
  0x1b   :  { %s1952_s14 = scalar_lea.vmem %s27_s30, 1024  ;;  %p1957_p11 = scmp.lt.s32.totalorder %s27_s30, %s27_s30 }
  0x1c   :  { %p1953_p10 = scmp.ne.s32.totalorder %s27_s30, %s1952_s14  ;;  %p1958_p12 = scmp.lt.s32.totalorder %s1952_s14, %s1952_s14 }
  0x1e   :  { %p1959_p13 = por %p1958_p12, %p1957_p11 }
  0x20   :  { %p1960_p0 = pnand %p1959_p13, %p1953_p10 }
  0x22   :  { %1963 = shalt.err (!%p1960_p0)
}
  0x23   :  { %32 = dma.hbm_to_vmem [thread:$0]  %s2491_s0, 1024, %s27_s30, [#allocation6], %s2056_s22, %s2056_s22, %s2057_s23  }
  0x24   :  { %s1972_s16 = scalar_lea.vmem %s54_s13, 16  ;;  %s1976_s5 = scalar_lea.vmem %s54_s13, 32 }
  0x25   :  { %p1973_p1 = scmp.ne.s32.totalorder %s54_s13, %s1972_s16  ;;  %p1977_p2 = scmp.lt.s32.totalorder %s54_s13, %s54_s13 }
  0x26   :  { %p1978_p3 = scmp.lt.s32.totalorder %s1976_s5, %s1972_s16 }
  0x28   :  { %p1979_p4 = por %p1978_p3, %p1977_p2 }
  0x2a   :  { %p1980_p5 = pnand %p1979_p4, %p1973_p1 }
  0x2c   :  { %1983 = shalt.err (!%p1980_p5)
}
  0x2d   :  { %56 = dma.hbm_to_vmem [thread:$0]  %s2494_s3, 16, %s54_s13, [#allocation9]  }
  0x2e   :  { %s2060_s19 = smov [#allocation13]   ;;  %s2061_s21 = smov [#allocation14]  }
  0x2f   :  { %s75_s20 = sshll.u32 %s2060_s19, 4  ;;  %s85_s24 = sshll.u32 %s2061_s21, 4  ;;  %s76_s20 = int_to_ptr.vmem [resolvable:$true] %s75_s20  ;;  %s86_s24 = int_to_ptr.vmem [resolvable:$true] %s85_s24 }
  0x30   :  { %s1992_s25 = scalar_lea.vmem %s76_s20, 128  ;;  %p1997_p7 = scmp.lt.s32.totalorder %s76_s20, %s76_s20 }
  0x31   :  { %p1993_p6 = scmp.ne.s32.totalorder %s76_s20, %s1992_s25  ;;  %p1998_p8 = scmp.lt.s32.totalorder %s1992_s25, %s1992_s25 }
  0x33   :  { %p1999_p9 = por %p1998_p8, %p1997_p7 }
  0x35   :  { %p2000_p10 = pnand %p1999_p9, %p1993_p6 }
  0x37   :  { %2003 = shalt.err (!%p2000_p10)
}
  0x38   :  { %78 = dma.hbm_to_vmem [thread:$0]  %s2497_s6, 128, %s76_s20, [#allocation12]  }
  0x39   :  { %s2012_s23 = scalar_lea.vmem %s86_s24, 128  ;;  %p2017_p12 = scmp.lt.s32.totalorder %s86_s24, %s86_s24 }
  0x3a   :  { %p2013_p11 = scmp.ne.s32.totalorder %s86_s24, %s2012_s23  ;;  %p2018_p13 = scmp.lt.s32.totalorder %s2012_s23, %s2012_s23 }
  0x3c   :  { %p2019_p0 = por %p2018_p13, %p2017_p12 }
  0x3e   :  { %p2020_p1 = pnand %p2019_p0, %p2013_p11 }
  0x40   :  { %2023 = shalt.err (!%p2020_p1)
}
  0x41   :  { %88 = dma.hbm_to_vmem [thread:$0]  %s2498_s7, 128, %s86_s24, [#allocation15]  }
  0x42   :  { %2044 = dma.done.wait [#allocation6], 1024  }
  0x43   :  { %2045 = vsyncadd [#allocation6], 4294966272 }
  0x44   :  { %2046 = dma.done.wait [#allocation9], 1296  }
  0x45   :  { %2047 = vsyncadd [#allocation9], 4294966000 }
  0x46   :  { %2048 = dma.done.wait [#allocation12], 256  }
  0x47   :  { %2049 = vsyncadd [#allocation12], 4294967040 }
  0x48   :  { %2050 = dma.done.wait [#allocation15], 128  }
  0x49   :  { %2051 = vsyncadd [#allocation15], 4294967168  ;;  %v2062_v0 = vmov 0.0   ;;  %vm2063_vm0 = vmmov 0   ;;  %v130_v1 = vld [vmem:[#allocation8 + $0x48] sm:$0xff]  ;;  %v129_v2 = vld [vmem:[#allocation8 + $0x40] sm:$0xff] }
  0x4a   :  { %1666 = vmatprep.subr.mxu1 %v2062_v0  ;;  %1674 = vmatprep.mubr.msk.f32.mxu1 %vm2063_vm0, %v2062_v0  ;;  %v128_v3 = vld [vmem:[#allocation8 + $0x38] sm:$0xff]  ;;  %v2158_v5 = vld [vmem:[%s2493_s2 + $0x10] sm:$0xff]  ;;  %v113_v7 = vld [vmem:[#allocation5] sm:$0xff]  ;;  %vm138_vm1 = vcmask 654336   ;;  %vm283_vm2 = vcmask 261120   ;;  %vm390_vm3 = vcmask 130048  }
  0x4b   :  { %1634 = vmatprep.subr.mxu0 %v130_v1  ;;  %v2152_v4 = vld [vmem:[%s2493_s2 + $0x18] sm:$0xff]  ;;  %v127_v6 = vld [vmem:[#allocation8 + $0x30] sm:$0xff]  ;;  %v2165_v8 = vld [vmem:[%s2493_s2 + $0x8] sm:$0xff]  ;;  %1654 = vmatprep.mubr.msk.f32.mxu0 %vm138_vm1, %v113_v7  ;;  %s2066_s15 = smov 48   ;;  %vm1512_vm4 = vcmask 64512  }
  0x4c   :  { %1635 = vmatpush3.msra.mxu0 %v130_v1  ;;  %1667 = vmatpush3.msra.mxu1 %v2152_v4  ;;  %v126_v9 = vld [vmem:[#allocation8 + $0x28] sm:$0xff]  ;;  %v2172_v10 = vld [vmem:[%s2493_s2] sm:$0xff]  ;;  %v124_v13 = vld [vmem:[#allocation8 + $0x18] sm:$0xff]  ;;  %s2064_s2 = smov 32  }
  0x4d   :  { %1636 = vmatprep.subr.mxu0 %v129_v2  ;;  %1668 = vmatprep.subr.mxu1 %v2062_v0  ;;  %v125_v11 = vld [vmem:[#allocation8 + $0x20] sm:$0xff]  ;;  %v123_v14 = vld [vmem:[#allocation8 + $0x10] sm:$0xff]  ;;  %v122_v15 = vld [vmem:[#allocation8 + $0x8] sm:$0xff] }
  0x4e   :  { %1637 = vmatpush3.msra.mxu0 %v129_v2  ;;  %1669 = vmatpush3.msra.mxu1 %v2158_v5  ;;  %v280_v12 = vld [vmem:[%s2495_s4] sm:$0xff]  ;;  %v114_v17 = vld [vmem:[#allocation5 + $0x8] sm:$0xff]  ;;  %v2202_v21 = vld [vmem:[#allocation10] ss:$0 sm:$0xff]  ;;  %s2065_s4 = smov 64  }
  0x4f   :  { %1638 = vmatprep.subr.mxu0 %v128_v3  ;;  %1670 = vmatprep.subr.mxu1 %v2062_v0  ;;  %v121_v16 = vld [vmem:[#allocation8] sm:$0xff]  ;;  %v281_v26 = vld [vmem:[#allocation11] sm:$0xff] }
  0x50   :  { %1639 = vmatpush3.msra.mxu0 %v128_v3  ;;  %1671 = vmatpush3.msra.mxu1 %v2165_v8  ;;  %v115_v55 = vld [vmem:[#allocation5 + $0x10] sm:$0xff]  ;;  %v116_v56 = vld [vmem:[#allocation5 + $0x18] sm:$0xff] }
  0x51   :  { %1640 = vmatprep.subr.mxu0 %v127_v6  ;;  %1672 = vmatprep.subr.mxu1 %v2062_v0 }
  0x52   :  { %1641 = vmatpush3.msra.mxu0 %v127_v6  ;;  %1673 = vmatpush3.msra.mxu1 %v2172_v10 }
  0x53   :  { %1642 = vmatprep.subr.mxu0 %v126_v9  ;;  %1675 = vmatmul.mubr.msk.f32.vlgmr.msra.gmra.mxu1 %vm283_vm2, %v280_v12 }
  0x54   :  { %1643 = vmatpush3.msra.mxu0 %v126_v9  ;;  %1677 = vmatprep.subr.mxu1 %v2062_v0 }
  0x55   :  { %1644 = vmatprep.subr.mxu0 %v125_v11  ;;  %1678 = vmatpush3.msra.mxu1 %v2152_v4 }
  0x56   :  { %1645 = vmatpush3.msra.mxu0 %v125_v11  ;;  %1679 = vmatprep.subr.mxu1 %v2062_v0 }
  0x57   :  { %1646 = vmatprep.subr.mxu0 %v124_v13  ;;  %1680 = vmatpush3.msra.mxu1 %v2158_v5 }
  0x58   :  { %1647 = vmatpush3.msra.mxu0 %v124_v13  ;;  %1681 = vmatprep.subr.mxu1 %v2062_v0 }
  0x59   :  { %1648 = vmatprep.subr.mxu0 %v123_v14  ;;  %1682 = vmatpush3.msra.mxu1 %v2165_v8 }
  0x5a   :  { %1649 = vmatpush3.msra.mxu0 %v123_v14  ;;  %1683 = vmatprep.subr.mxu1 %v2062_v0 }
  0x5b   :  { %1650 = vmatprep.subr.mxu0 %v122_v15  ;;  %1684 = vmatpush3.msra.mxu1 %v2172_v10 }
  0x5c   :  { %1651 = vmatpush3.msra.mxu0 %v122_v15  ;;  %1685 = vmatprep.mubr.msk.f32.mxu1 %vm2063_vm0, %v2062_v0 }
  0x5d   :  { %1652 = vmatprep.subr.mxu0 %v121_v16  ;;  %1688 = vmatprep.subr.mxu1 %v2062_v0 }
  0x5e   :  { %1653 = vmatpush3.msra.mxu0 %v121_v16 }
  0x5f   :  { %1655 = vmatmul.mubr.msk.f32.vlgmr.msra.gmra.mxu0 %vm138_vm1, %v114_v17  ;;  %1710 = vmatprep.subr.mxu0 %v2062_v0 }
  0x60   :  { %1711 = vmatpush3.msra.mxu0 %v2152_v4  ;;  %1657 = vmatprep.mubr.msk.f32.mxu0 %vm138_vm1, %v115_v55 }
  0x61   :  { %1712 = vmatprep.subr.mxu0 %v2062_v0 }
  0x62   :  { %1713 = vmatpush3.msra.mxu0 %v2158_v5 }
  0x63   :  { %1714 = vmatprep.subr.mxu0 %v2062_v0  ;;  %1658 = vmatmul.mubr.msk.f32.gmra.mxu0 %vm138_vm1, %v116_v56 }
  0x64   :  { %1715 = vmatpush3.msra.mxu0 %v2165_v8 }
  0x65   :  { %1716 = vmatprep.subr.mxu0 %v2062_v0 }
  0x66   :  { %1717 = vmatpush3.msra.mxu0 %v2172_v10 }
  0x67   :  { %1732 = vmatprep.subr.mxu0 %v2062_v0 }
 0x113   :  { %v353_v18 = vpop.f32.mrf.mxu1 }
 0x115   :  { %v1676_v19 = vpop.f32.mrf.mxu1 }
 0x11f   :  { %v1656_v20 = vpop.f32.mrf.mxu0 }
 0x120   :  { %v235_v41 = vadd.f32 %v1656_v20, %v2202_v21 }
 0x121   :  { %v229_v22 = vpop.f32.mrf.mxu0 }
 0x122   :  { %v230_v23 = vadd.f32 %v2202_v21, %v229_v22 }
 0x123   :  { %v1659_v61 = vpop.f32.mrf.mxu0 }
 0x124   :  { %v357_v24 = vadd.f32 %v353_v18, %v230_v23  ;;  %v245_v23 = vadd.f32 %v1659_v61, %v2202_v21 }
 0x125   :  { %v239_v62 = vpop.f32.mrf.mxu0 }
 0x126   :  { %1782 = vtanh.f32 %v357_v24  ;;  %v1553_v27 = vmul.f32 -1.442695, %v357_v24  ;;  %v240_v63 = vadd.f32 %v2202_v21, %v239_v62 }
 0x128   :  { %1784 = vpow2.f32 %v1553_v27 }
 0x133   :  { %v1783_v25 = vpop.eup %1782 }
 0x134   :  { %371 = vrot.lane.b32.xlu0 %v1783_v25, %s2064_s2 }
 0x135   :  { %v1785_v28 = vpop.eup %1784 }
 0x136   :  { %v361_v29 = vadd.f32 1.0, %v1785_v28 }
 0x138   :  { %366 = vrot.lane.b32.xlu0 %v281_v26, %s2064_s2  ;;  %1786 = vrcp.f32 %v361_v29 }
 0x145   :  { %v1787_v30 = vpop.eup %1786 }
 0x1a6   :  { %v372_v31 = vpop.permute.xlu0 %371 }
 0x1a7   :  { %v374_v32 = vmul.f32 %v1787_v30, %v372_v31 }
 0x1a9   :  { %376 = vrot.lane.b32.xlu1 %v374_v32, %s2064_s2 }
 0x1aa   :  { %v367_v33 = vpop.permute.xlu0 %366 }
 0x1ab   :  { %v369_v34 = vmul.f32 %v1787_v30, %v367_v33 }
 0x21b   :  { %v377_v35 = vpop.permute.xlu1 %376 }
 0x21c   :  { %v379_v36 = vadd.f32 %v377_v35, %v369_v34 }
 0x21e   :  { %1788 = vtanh.f32 %v379_v36 }
 0x22b   :  { %v1789_v37 = vpop.eup %1788 }
 0x22c   :  { %382 = vrot.lane.b32.xlu1 %v1789_v37, %s2064_s2  ;;  %v117_v37 = vld [vmem:[#allocation5 + $0x20] sm:$0xff] }
 0x22d   :  { %1660 = vmatprep.mubr.msk.f32.mxu0 %vm138_vm1, %v117_v37 }
 0x29e   :  { %v383_v38 = vpop.permute.xlu1 %382 }
 0x29f   :  { %v2209_v39 = vmul.f32 %v1787_v30, %v383_v38  ;;  %v118_v38 = vld [vmem:[#allocation5 + $0x28] sm:$0xff] }
 0x2a0   :  { %1661 = vmatmul.mubr.msk.f32.gmra.mxu0 %vm138_vm1, %v118_v38 }
 0x2a1   :  { %387 = vrot.lane.b32.xlu0 %v2209_v39, %s2065_s4 }
 0x313   :  { %v388_v40 = vpop.permute.xlu0 %387 }
 0x314   :  { %391 = vst.msk [vmem:[#allocation3] sm:$0xff] %vm390_vm3, %v388_v40  ;;  %1686 = vmatmul.mubr.msk.f32.vlgmr.msra.gmra.mxu1 %vm283_vm2, %v388_v40  ;;  %v119_v40 = vld [vmem:[#allocation5 + $0x30] sm:$0xff] }
 0x315   :  { %1689 = vmatpush3.msra.mxu1 %v2152_v4  ;;  %1696 = vmatprep.mubr.msk.f32.mxu1 %vm2063_vm0, %v2062_v0 }
 0x316   :  { %1690 = vmatprep.subr.mxu1 %v2062_v0  ;;  %1663 = vmatprep.mubr.msk.f32.mxu0 %vm138_vm1, %v119_v40 }
 0x317   :  { %1691 = vmatpush3.msra.mxu1 %v2158_v5 }
 0x318   :  { %1692 = vmatprep.subr.mxu1 %v2062_v0 }
 0x319   :  { %1693 = vmatpush3.msra.mxu1 %v2165_v8 }
 0x31a   :  { %1694 = vmatprep.subr.mxu1 %v2062_v0 }
 0x31b   :  { %1695 = vmatpush3.msra.mxu1 %v2172_v10 }
 0x31c   :  { %1699 = vmatprep.subr.mxu1 %v2062_v0 }
 0x3d4   :  { %v466_v42 = vpop.f32.mrf.mxu1 }
 0x3d5   :  { %v470_v43 = vadd.f32 %v466_v42, %v235_v41  ;;  %v120_v41 = vld [vmem:[#allocation5 + $0x38] sm:$0xff] }
 0x3d6   :  { %v1687_v44 = vpop.f32.mrf.mxu1  ;;  %1664 = vmatmul.mubr.msk.f32.gmra.mxu0 %vm138_vm1, %v120_v41 }
 0x3d7   :  { %1790 = vtanh.f32 %v470_v43  ;;  %v1555_v46 = vmul.f32 -1.442695, %v470_v43  ;;  %1718 = vmatprep.mubr.msk.f32.mxu0 %vm2063_vm0, %v2062_v0 }
 0x3d9   :  { %1792 = vpow2.f32 %v1555_v46  ;;  %v1662_v46 = vpop.f32.mrf.mxu0 }
 0x3e4   :  { %v1791_v45 = vpop.eup %1790 }
 0x3e5   :  { %480 = vrot.lane.b32.xlu1 %v1791_v45, %s2064_s2 }
 0x3e6   :  { %v1793_v47 = vpop.eup %1792 }
 0x3e7   :  { %v474_v48 = vadd.f32 1.0, %v1793_v47  ;;  %v249_v47 = vpop.f32.mrf.mxu0 }
 0x3e9   :  { %1794 = vrcp.f32 %v474_v48 }
 0x3f6   :  { %v1795_v49 = vpop.eup %1794 }
 0x3f7   :  { %v478_v52 = vmul.f32 %v1795_v49, %v379_v36 }
 0x457   :  { %v481_v50 = vpop.permute.xlu1 %480 }
 0x458   :  { %v483_v51 = vmul.f32 %v1795_v49, %v481_v50  ;;  %v250_v50 = vadd.f32 %v2202_v21, %v249_v47 }
 0x45a   :  { %485 = vrot.lane.b32.xlu0 %v483_v51, %s2064_s2 }
 0x496   :  { %v2293_v48 = vpop.f32.mrf.mxu0 }
 0x4cc   :  { %v486_v53 = vpop.permute.xlu0 %485 }
 0x4cd   :  { %v488_v54 = vadd.f32 %v486_v53, %v478_v52 }
 0x4cf   :  { %1796 = vtanh.f32 %v488_v54 }
 0x4dc   :  { %v1797_v57 = vpop.eup %1796 }
 0x4dd   :  { %491 = vrot.lane.b32.xlu1 %v1797_v57, %s2064_s2 }
 0x54f   :  { %v492_v58 = vpop.permute.xlu1 %491 }
 0x550   :  { %v2231_v59 = vmul.f32 %v1795_v49, %v492_v58  ;;  %v2295_v49 = vpop.f32.mrf.mxu0 }
 0x552   :  { %496 = vrot.lane.b32.xlu0 %v2231_v59, %s2065_s4 }
 0x5c4   :  { %v497_v60 = vpop.permute.xlu0 %496 }
 0x5c5   :  { %500 = vst.msk [vmem:[#allocation3 + $0x8] sm:$0xff] %vm390_vm3, %v497_v60  ;;  %1697 = vmatmul.mubr.msk.f32.vlgmr.msra.gmra.mxu1 %vm283_vm2, %v497_v60 }
 0x5c6   :  { %1700 = vmatpush3.msra.mxu1 %v2152_v4  ;;  %1707 = vmatprep.mubr.msk.f32.mxu1 %vm2063_vm0, %v2062_v0 }
 0x5c7   :  { %1701 = vmatprep.subr.mxu1 %v2062_v0 }
 0x5c8   :  { %1702 = vmatpush3.msra.mxu1 %v2158_v5 }
 0x5c9   :  { %1703 = vmatprep.subr.mxu1 %v2062_v0 }
 0x5ca   :  { %1704 = vmatpush3.msra.mxu1 %v2165_v8 }
 0x5cb   :  { %1705 = vmatprep.subr.mxu1 %v2062_v0 }
 0x5cc   :  { %1706 = vmatpush3.msra.mxu1 %v2172_v10 }
 0x5cd   :  { %1721 = vmatprep.subr.mxu1 %v2062_v0 }
 0x685   :  { %v575_v1 = vpop.f32.mrf.mxu1 }
 0x686   :  { %v579_v2 = vadd.f32 %v575_v1, %v240_v63 }
 0x687   :  { %v1698_v3 = vpop.f32.mrf.mxu1 }
 0x688   :  { %1798 = vtanh.f32 %v579_v2  ;;  %v1557_v7 = vmul.f32 -1.442695, %v579_v2 }
 0x68a   :  { %1800 = vpow2.f32 %v1557_v7 }
 0x695   :  { %v1799_v6 = vpop.eup %1798 }
 0x696   :  { %589 = vrot.lane.b32.xlu1 %v1799_v6, %s2064_s2 }
 0x697   :  { %v1801_v9 = vpop.eup %1800 }
 0x698   :  { %v583_v11 = vadd.f32 1.0, %v1801_v9  ;;  %v255_v9 = vadd.f32 %v1662_v46, %v2202_v21  ;;  %v265_v46 = vadd.f32 %v2293_v48, %v2202_v21 }
 0x69a   :  { %1802 = vrcp.f32 %v583_v11 }
 0x6a7   :  { %v1803_v12 = vpop.eup %1802 }
 0x6a8   :  { %v587_v15 = vmul.f32 %v1803_v12, %v488_v54 }
 0x708   :  { %v590_v13 = vpop.permute.xlu1 %589 }
 0x709   :  { %v592_v14 = vmul.f32 %v1803_v12, %v590_v13 }
 0x70b   :  { %594 = vrot.lane.b32.xlu0 %v592_v14, %s2064_s2 }
 0x77d   :  { %v595_v16 = vpop.permute.xlu0 %594 }
 0x77e   :  { %v597_v17 = vadd.f32 %v595_v16, %v587_v15 }
 0x780   :  { %1804 = vtanh.f32 %v597_v17 }
 0x78d   :  { %v1805_v18 = vpop.eup %1804 }
 0x78e   :  { %600 = vrot.lane.b32.xlu1 %v1805_v18, %s2064_s2 }
 0x800   :  { %v601_v19 = vpop.permute.xlu1 %600 }
 0x801   :  { %v2251_v20 = vmul.f32 %v1803_v12, %v601_v19 }
 0x803   :  { %605 = vrot.lane.b32.xlu0 %v2251_v20, %s2065_s4 }
 0x875   :  { %v606_v22 = vpop.permute.xlu0 %605 }
 0x876   :  { %609 = vst.msk [vmem:[#allocation3 + $0x10] sm:$0xff] %vm390_vm3, %v606_v22  ;;  %1708 = vmatmul.mubr.msk.f32.vlgmr.msra.gmra.mxu1 %vm283_vm2, %v606_v22 }
 0x877   :  { %1722 = vmatpush3.msra.mxu1 %v2152_v4  ;;  %1729 = vmatprep.mubr.msk.f32.mxu1 %vm2063_vm0, %v2062_v0 }
 0x878   :  { %1723 = vmatprep.subr.mxu1 %v2062_v0 }
 0x879   :  { %1724 = vmatpush3.msra.mxu1 %v2158_v5 }
 0x87a   :  { %1725 = vmatprep.subr.mxu1 %v2062_v0 }
 0x87b   :  { %1726 = vmatpush3.msra.mxu1 %v2165_v8 }
 0x87c   :  { %1727 = vmatprep.subr.mxu1 %v2062_v0 }
 0x87d   :  { %1728 = vmatpush3.msra.mxu1 %v2172_v10 }
 0x87e   :  { %1743 = vmatprep.subr.mxu1 %v2062_v0 }
 0x936   :  { %v684_v24 = vpop.f32.mrf.mxu1 }
 0x937   :  { %v688_v25 = vadd.f32 %v684_v24, %v245_v23 }
 0x938   :  { %v1709_v26 = vpop.f32.mrf.mxu1 }
 0x939   :  { %1806 = vtanh.f32 %v688_v25  ;;  %v1559_v28 = vmul.f32 -1.442695, %v688_v25  ;;  %v260_v26 = vadd.f32 %v2202_v21, %v2295_v49 }
 0x93b   :  { %1808 = vpow2.f32 %v1559_v28 }
 0x946   :  { %v1807_v27 = vpop.eup %1806 }
 0x947   :  { %698 = vrot.lane.b32.xlu1 %v1807_v27, %s2064_s2 }
 0x948   :  { %v1809_v29 = vpop.eup %1808 }
 0x949   :  { %v692_v30 = vadd.f32 1.0, %v1809_v29 }
 0x94b   :  { %1810 = vrcp.f32 %v692_v30 }
 0x958   :  { %v1811_v31 = vpop.eup %1810 }
 0x959   :  { %v696_v34 = vmul.f32 %v1811_v31, %v597_v17 }
 0x9b9   :  { %v699_v32 = vpop.permute.xlu1 %698 }
 0x9ba   :  { %v701_v33 = vmul.f32 %v1811_v31, %v699_v32 }
 0x9bc   :  { %703 = vrot.lane.b32.xlu0 %v701_v33, %s2064_s2 }
 0xa2e   :  { %v704_v35 = vpop.permute.xlu0 %703 }
 0xa2f   :  { %v706_v36 = vadd.f32 %v704_v35, %v696_v34 }
 0xa31   :  { %1812 = vtanh.f32 %v706_v36 }
 0xa3e   :  { %v1813_v42 = vpop.eup %1812 }
 0xa3f   :  { %709 = vrot.lane.b32.xlu1 %v1813_v42, %s2064_s2 }
 0xab1   :  { %v710_v43 = vpop.permute.xlu1 %709 }
 0xab2   :  { %v2277_v44 = vmul.f32 %v1811_v31, %v710_v43 }
 0xab4   :  { %714 = vrot.lane.b32.xlu0 %v2277_v44, %s2065_s4 }
 0xb26   :  { %v715_v45 = vpop.permute.xlu0 %714 }
 0xb27   :  { %718 = vst.msk [vmem:[#allocation3 + $0x18] sm:$0xff] %vm390_vm3, %v715_v45  ;;  %1719 = vmatmul.mubr.msk.f32.vlgmr.msra.gmra.mxu0 %vm283_vm2, %v715_v45 }
 0xb28   :  { %1733 = vmatpush3.msra.mxu0 %v2152_v4  ;;  %1740 = vmatprep.mubr.msk.f32.mxu0 %vm2063_vm0, %v2062_v0 }
 0xb29   :  { %1734 = vmatprep.subr.mxu0 %v2062_v0 }
 0xb2a   :  { %1735 = vmatpush3.msra.mxu0 %v2158_v5 }
 0xb2b   :  { %1736 = vmatprep.subr.mxu0 %v2062_v0 }
 0xb2c   :  { %1737 = vmatpush3.msra.mxu0 %v2165_v8 }
 0xb2d   :  { %1738 = vmatprep.subr.mxu0 %v2062_v0 }
 0xb2e   :  { %1739 = vmatpush3.msra.mxu0 %v2172_v10 }
 0xb2f   :  { %1754 = vmatprep.subr.mxu0 %v2062_v0 }
 0xbe7   :  { %v793_v51 = vpop.f32.mrf.mxu0 }
 0xbe8   :  { %v797_v52 = vadd.f32 %v793_v51, %v250_v50 }
 0xbe9   :  { %v1720_v53 = vpop.f32.mrf.mxu0 }
 0xbea   :  { %1814 = vtanh.f32 %v797_v52  ;;  %v1561_v55 = vmul.f32 -1.442695, %v797_v52 }
 0xbec   :  { %1816 = vpow2.f32 %v1561_v55 }
 0xbf7   :  { %v1815_v54 = vpop.eup %1814 }
 0xbf8   :  { %807 = vrot.lane.b32.xlu1 %v1815_v54, %s2064_s2 }
 0xbf9   :  { %v1817_v56 = vpop.eup %1816 }
 0xbfa   :  { %v801_v57 = vadd.f32 1.0, %v1817_v56 }
 0xbfc   :  { %1818 = vrcp.f32 %v801_v57 }
 0xc09   :  { %v1819_v58 = vpop.eup %1818 }
 0xc0a   :  { %v805_v62 = vmul.f32 %v1819_v58, %v706_v36 }
 0xc6a   :  { %v808_v60 = vpop.permute.xlu1 %807 }
 0xc6b   :  { %v810_v61 = vmul.f32 %v1819_v58, %v808_v60 }
 0xc6d   :  { %812 = vrot.lane.b32.xlu0 %v810_v61, %s2064_s2 }
 0xcdf   :  { %v813_v63 = vpop.permute.xlu0 %812 }
 0xce0   :  { %v815_v1 = vadd.f32 %v813_v63, %v805_v62 }
 0xce2   :  { %1820 = vtanh.f32 %v815_v1 }
 0xcef   :  { %v1821_v2 = vpop.eup %1820 }
 0xcf0   :  { %818 = vrot.lane.b32.xlu1 %v1821_v2, %s2064_s2 }
 0xd62   :  { %v819_v3 = vpop.permute.xlu1 %818 }
 0xd63   :  { %v2301_v6 = vmul.f32 %v1819_v58, %v819_v3 }
 0xd65   :  { %823 = vrot.lane.b32.xlu0 %v2301_v6, %s2065_s4 }
 0xdd7   :  { %v824_v7 = vpop.permute.xlu0 %823 }
 0xdd8   :  { %827 = vst.msk [vmem:[#allocation3 + $0x20] sm:$0xff] %vm390_vm3, %v824_v7  ;;  %1730 = vmatmul.mubr.msk.f32.vlgmr.msra.gmra.mxu1 %vm283_vm2, %v824_v7 }
 0xdd9   :  { %1744 = vmatpush3.msra.mxu1 %v2152_v4  ;;  %1751 = vmatprep.mubr.msk.f32.mxu1 %vm2063_vm0, %v2062_v0 }
 0xdda   :  { %1745 = vmatprep.subr.mxu1 %v2062_v0 }
 0xddb   :  { %1746 = vmatpush3.msra.mxu1 %v2158_v5 }
 0xddc   :  { %1747 = vmatprep.subr.mxu1 %v2062_v0 }
 0xddd   :  { %1748 = vmatpush3.msra.mxu1 %v2165_v8 }
 0xdde   :  { %1749 = vmatprep.subr.mxu1 %v2062_v0 }
 0xddf   :  { %1750 = vmatpush3.msra.mxu1 %v2172_v10 }
 0xe98   :  { %v902_v11 = vpop.f32.mrf.mxu1 }
 0xe99   :  { %v906_v12 = vadd.f32 %v902_v11, %v255_v9  ;;  %v2364_v9 = vld [vmem:[#allocation3 + $0x20] sm:$0xff]  ;;  %v2366_v11 = vld [vmem:[#allocation3 + $0x18] sm:$0xff] }
 0xe9a   :  { %v1731_v4 = vpop.f32.mrf.mxu1 }
 0xe9b   :  { %1822 = vtanh.f32 %v906_v12  ;;  %v1563_v14 = vmul.f32 -1.442695, %v906_v12 }
 0xe9d   :  { %1824 = vpow2.f32 %v1563_v14 }
 0xea8   :  { %v1823_v13 = vpop.eup %1822 }
 0xea9   :  { %916 = vrot.lane.b32.xlu1 %v1823_v13, %s2064_s2 }
 0xeaa   :  { %v1825_v5 = vpop.eup %1824 }
 0xeab   :  { %v910_v15 = vadd.f32 1.0, %v1825_v5 }
 0xead   :  { %1826 = vrcp.f32 %v910_v15  ;;  %v2380_v15 = vld [vmem:[#allocation13] sm:$0xff] }
 0xeba   :  { %v1827_v16 = vpop.eup %1826 }
 0xebb   :  { %v914_v10 = vmul.f32 %v1827_v16, %v815_v1 }
 0xf1b   :  { %v917_v8 = vpop.permute.xlu1 %916 }
 0xf1c   :  { %v919_v17 = vmul.f32 %v1827_v16, %v917_v8 }
 0xf1e   :  { %921 = vrot.lane.b32.xlu0 %v919_v17, %s2064_s2 }
 0xf90   :  { %v922_v18 = vpop.permute.xlu0 %921 }
 0xf91   :  { %v924_v19 = vadd.f32 %v922_v18, %v914_v10 }
 0xf93   :  { %1828 = vtanh.f32 %v924_v19 }
 0xfa0   :  { %v1829_v22 = vpop.eup %1828 }
 0xfa1   :  { %927 = vrot.lane.b32.xlu1 %v1829_v22, %s2064_s2 }
0x1013   :  { %v928_v23 = vpop.permute.xlu1 %927 }
0x1014   :  { %v2320_v24 = vmul.f32 %v1827_v16, %v928_v23 }
0x1016   :  { %932 = vrot.lane.b32.xlu0 %v2320_v24, %s2065_s4 }
0x1088   :  { %v933_v25 = vpop.permute.xlu0 %932 }
0x1089   :  { %936 = vst.msk [vmem:[#allocation3 + $0x28] sm:$0xff] %vm390_vm3, %v933_v25  ;;  %1741 = vmatmul.mubr.msk.f32.vlgmr.msra.gmra.mxu0 %vm283_vm2, %v933_v25 }
0x108a   :  { %1758 = vmatprep.mubr.msk.f32.mxu0 %vm2063_vm0, %v2062_v0 }
0x1090   :  { %v2372_v4 = vld [vmem:[#allocation3 + $0x28] sm:$0xff] }
0x1149   :  { %v1011_v27 = vpop.f32.mrf.mxu0 }
0x114a   :  { %v1015_v28 = vadd.f32 %v1011_v27, %v260_v26 }
0x114b   :  { %v1742_v29 = vpop.f32.mrf.mxu0 }
0x114c   :  { %1830 = vtanh.f32 %v1015_v28  ;;  %v1565_v31 = vmul.f32 -1.442695, %v1015_v28 }
0x114e   :  { %1832 = vpow2.f32 %v1565_v31 }
0x1159   :  { %v1831_v30 = vpop.eup %1830 }
0x115a   :  { %1025 = vrot.lane.b32.xlu1 %v1831_v30, %s2064_s2 }
0x115b   :  { %v1833_v32 = vpop.eup %1832 }
0x115c   :  { %v1019_v33 = vadd.f32 1.0, %v1833_v32 }
0x115e   :  { %1834 = vrcp.f32 %v1019_v33 }
0x116b   :  { %v1835_v34 = vpop.eup %1834 }
0x116c   :  { %v1023_v37 = vmul.f32 %v1835_v34, %v924_v19 }
0x11cc   :  { %v1026_v35 = vpop.permute.xlu1 %1025 }
0x11cd   :  { %v1028_v36 = vmul.f32 %v1835_v34, %v1026_v35 }
0x11cf   :  { %1030 = vrot.lane.b32.xlu0 %v1028_v36, %s2064_s2 }
0x1241   :  { %v1031_v38 = vpop.permute.xlu0 %1030 }
0x1242   :  { %v1033_v40 = vadd.f32 %v1031_v38, %v1023_v37 }
0x1244   :  { %1836 = vtanh.f32 %v1033_v40 }
0x1251   :  { %v1837_v41 = vpop.eup %1836 }
0x1252   :  { %1036 = vrot.lane.b32.xlu1 %v1837_v41, %s2064_s2 }
0x12c4   :  { %v1037_v42 = vpop.permute.xlu1 %1036 }
0x12c5   :  { %v1039_v43 = vmul.f32 %v1835_v34, %v1037_v42 }
0x12c7   :  { %1041 = vrot.lane.b32.xlu0 %v1039_v43, %s2065_s4 }
0x1339   :  { %v1042_v45 = vpop.permute.xlu0 %1041 }
0x133a   :  { %1045 = vst.msk [vmem:[#allocation3 + $0x30] sm:$0xff] %vm390_vm3, %v1042_v45  ;;  %1752 = vmatmul.mubr.msk.f32.vlgmr.msra.gmra.mxu1 %vm283_vm2, %v1042_v45 }
0x1341   :  { %v2370_v12 = vld [vmem:[#allocation3 + $0x30] sm:$0xff] }
0x13fa   :  { %v1120_v47 = vpop.f32.mrf.mxu1 }
0x13fb   :  { %v1124_v49 = vadd.f32 %v1120_v47, %v265_v46 }
0x13fc   :  { %v1753_v50 = vpop.f32.mrf.mxu1 }
0x13fd   :  { %1838 = vtanh.f32 %v1124_v49  ;;  %v1567_v52 = vmul.f32 -1.442695, %v1124_v49 }
0x13ff   :  { %1840 = vpow2.f32 %v1567_v52 }
0x140a   :  { %v1839_v51 = vpop.eup %1838 }
0x140b   :  { %1134 = vrot.lane.b32.xlu1 %v1839_v51, %s2064_s2 }
0x140c   :  { %v1841_v53 = vpop.eup %1840 }
0x140d   :  { %v1128_v54 = vadd.f32 1.0, %v1841_v53 }
0x140f   :  { %1842 = vrcp.f32 %v1128_v54 }
0x141c   :  { %v1843_v55 = vpop.eup %1842 }
0x141d   :  { %v1132_v21 = vmul.f32 %v1843_v55, %v1033_v40  ;;  %v1224_v40 = vld [vmem:[#allocation14] sm:$0xff] }
0x147d   :  { %v1135_v56 = vpop.permute.xlu1 %1134 }
0x147e   :  { %v1137_v57 = vmul.f32 %v1843_v55, %v1135_v56 }
0x1480   :  { %1139 = vrot.lane.b32.xlu0 %v1137_v57, %s2064_s2 }
0x1484   :  { %392 = vrot.lane.b32.xlu0 %v2209_v39, %s2066_s15 }
0x1488   :  { %610 = vrot.lane.b32.xlu0 %v2251_v20, %s2066_s15 }
0x148c   :  { %828 = vrot.lane.b32.xlu0 %v2301_v6, %s2066_s15  ;;  %v2354_v6 = vld [vmem:[#allocation3 + $0x8] sm:$0xff] }
0x1490   :  { %1046 = vrot.lane.b32.xlu0 %v1039_v43, %s2066_s15 }
0x14f2   :  { %v1140_v48 = vpop.permute.xlu0 %1139 }
0x14f3   :  { %v1142_v58 = vadd.f32 %v1140_v48, %v1132_v21 }
0x14f5   :  { %1844 = vtanh.f32 %v1142_v58 }
0x14f6   :  { %v393_v60 = vpop.permute.xlu0 %392  ;;  %1846 = vtanh.f32 %v2354_v6 }
0x14f7   :  { %396 = vst.msk [vmem:[#allocation4 + $0x38] sm:$0xff] %vm390_vm3, %v393_v60 }
0x14fa   :  { %v611_v61 = vpop.permute.xlu0 %610 }
0x14fb   :  { %614 = vst.msk [vmem:[#allocation4 + $0x28] sm:$0xff] %vm390_vm3, %v611_v61 }
0x14fe   :  { %v829_v62 = vpop.permute.xlu0 %828  ;;  %v2414_v58 = vld [vmem:[#allocation4 + $0x38] sm:$0xff] }
0x14ff   :  { %832 = vst.msk [vmem:[#allocation4 + $0x18] sm:$0xff] %vm390_vm3, %v829_v62 }
0x1502   :  { %v1845_v63 = vpop.eup %1844  ;;  %v1047_v39 = vpop.permute.xlu0 %1046  ;;  %v2394_v26 = vld [vmem:[#allocation4 + $0x28] sm:$0xff] }
0x1503   :  { %1050 = vst.msk [vmem:[#allocation4 + $0x8] sm:$0xff] %vm390_vm3, %v1047_v39  ;;  %1145 = vrot.lane.b32.xlu1 %v1845_v63, %s2064_s2  ;;  %v1847_v13 = vpop.eup %1846 }
0x1504   :  { %v1185_v16 = vmul.f32 %v1847_v13, %v2380_v15 }
0x1506   :  { %v2387_v18 = vld [vmem:[#allocation4 + $0x18] sm:$0xff]  ;;  %v1195_v19 = vsel %vm390_vm3, %v1185_v16, 0.0 }
0x1507   :  { %501 = vrot.lane.b32.xlu1 %v2231_v59, %s2066_s15  ;;  %v2358_v59 = vld [vmem:[#allocation3 + $0x10] sm:$0xff] }
0x1508   :  { %1848 = vtanh.f32 %v2358_v59 }
0x150a   :  { %v2378_v5 = vld [vmem:[#allocation4 + $0x8] sm:$0xff] }
0x150b   :  { %719 = vrot.lane.b32.xlu1 %v2277_v44, %s2066_s15  ;;  %v2360_v44 = vld [vmem:[#allocation3] sm:$0xff] }
0x150c   :  { %1850 = vtanh.f32 %v2360_v44 }
0x150d   :  { %1852 = vtanh.f32 %v2364_v9 }
0x150e   :  { %1854 = vtanh.f32 %v2366_v11 }
0x150f   :  { %937 = vrot.lane.b32.xlu1 %v2320_v24, %s2066_s15  ;;  %1856 = vtanh.f32 %v2370_v12 }
0x1510   :  { %1858 = vtanh.f32 %v2372_v4 }
0x1515   :  { %v1849_v8 = vpop.eup %1848 }
0x1516   :  { %v1186_v22 = vmul.f32 %v1849_v8, %v2380_v15 }
0x1518   :  { %v1198_v27 = vsel %vm390_vm3, %v1186_v22, 0.0  ;;  %v1363_v22 = vld [vmem:[%s2500_s9 + $0x8] sm:$0xff] }
0x1519   :  { %v1851_v10 = vpop.eup %1850  ;;  %1755 = vmatpush3.msra.mxu0 %v1363_v22 }
0x151a   :  { %v1853_v23 = vpop.eup %1852  ;;  %v1184_v24 = vmul.f32 %v1851_v10, %v2380_v15  ;;  %1756 = vmatprep.subr.mxu0 %v2062_v0 }
0x151b   :  { %v1855_v25 = vpop.eup %1854  ;;  %v1188_v28 = vmul.f32 %v1853_v23, %v2380_v15 }
0x151c   :  { %v1857_v29 = vpop.eup %1856  ;;  %v1192_v30 = vsel %vm390_vm3, %v1184_v24, 0.0  ;;  %v1187_v31 = vmul.f32 %v1855_v25, %v2380_v15 }
0x151d   :  { %v1859_v32 = vpop.eup %1858  ;;  %v1204_v33 = vsel %vm390_vm3, %v1188_v28, 0.0  ;;  %v1190_v34 = vmul.f32 %v1857_v29, %v2380_v15 }
0x151e   :  { %v1201_v36 = vsel %vm390_vm3, %v1187_v31, 0.0  ;;  %v1189_v37 = vmul.f32 %v1859_v32, %v2380_v15 }
0x151f   :  { %v1210_v41 = vsel %vm390_vm3, %v1190_v34, 0.0 }
0x1520   :  { %v1207_v45 = vsel %vm390_vm3, %v1189_v37, 0.0 }
0x1575   :  { %v1146_v20 = vpop.permute.xlu1 %1145 }
0x1576   :  { %v1148_v1 = vmul.f32 %v1843_v55, %v1146_v20 }
0x1578   :  { %1155 = vrot.lane.b32.xlu0 %v1148_v1, %s2066_s15  ;;  %1150 = vrot.lane.b32.xlu1 %v1148_v1, %s2065_s4 }
0x1579   :  { %v502_v2 = vpop.permute.xlu1 %501 }
0x157a   :  { %505 = vst.msk [vmem:[#allocation4 + $0x30] sm:$0xff] %vm390_vm3, %v502_v2 }
0x157d   :  { %v720_v3 = vpop.permute.xlu1 %719 }
0x157e   :  { %723 = vst.msk [vmem:[#allocation4 + $0x20] sm:$0xff] %vm390_vm3, %v720_v3 }
0x1581   :  { %v938_v7 = vpop.permute.xlu1 %937  ;;  %v2416_v60 = vld [vmem:[#allocation4 + $0x30] sm:$0xff] }
0x1582   :  { %941 = vst.msk [vmem:[#allocation4 + $0x10] sm:$0xff] %vm390_vm3, %v938_v7 }
0x1585   :  { %v2385_v17 = vld [vmem:[#allocation4 + $0x20] sm:$0xff] }
0x1589   :  { %v2376_v14 = vld [vmem:[#allocation4 + $0x10] sm:$0xff] }
0x158a   :  { %1860 = vtanh.f32 %v2376_v14 }
0x158b   :  { %1862 = vtanh.f32 %v2378_v5 }
0x158c   :  { %1864 = vtanh.f32 %v2385_v17 }
0x158d   :  { %1866 = vtanh.f32 %v2387_v18 }
0x158e   :  { %1868 = vtanh.f32 %v2394_v26 }
0x158f   :  { %1870 = vtanh.f32 %v2414_v58 }
0x1590   :  { %1872 = vtanh.f32 %v2416_v60 }
0x1597   :  { %1196 = vadd.xlane.f32.xlu0 %v1195_v19  ;;  %v1861_v35 = vpop.eup %1860 }
0x1598   :  { %v1863_v38 = vpop.eup %1862  ;;  %v1227_v42 = vmul.f32 %v1861_v35, %v1224_v40 }
0x1599   :  { %v1865_v43 = vpop.eup %1864  ;;  %v1226_v46 = vmul.f32 %v1863_v38, %v1224_v40 }
0x159a   :  { %v1867_v47 = vpop.eup %1866  ;;  %v1239_v49 = vsel %vm390_vm3, %v1227_v42, 0.0  ;;  %v1229_v50 = vmul.f32 %v1865_v43, %v1224_v40 }
0x159b   :  { %1199 = vadd.xlane.f32.xlu0 %v1198_v27  ;;  %v1236_v51 = vsel %vm390_vm3, %v1226_v46, 0.0  ;;  %v1228_v52 = vmul.f32 %v1867_v47, %v1224_v40  ;;  %v1869_v53 = vpop.eup %1868 }
0x159c   :  { %1193 = vadd.xlane.f32.xlu1 %v1192_v30  ;;  %v1245_v54 = vsel %vm390_vm3, %v1229_v50, 0.0  ;;  %v1230_v56 = vmul.f32 %v1869_v53, %v1224_v40  ;;  %v1871_v63 = vpop.eup %1870 }
0x159d   :  { %v1242_v55 = vsel %vm390_vm3, %v1228_v52, 0.0  ;;  %v1873_v39 = vpop.eup %1872  ;;  %v1232_v8 = vmul.f32 %v1871_v63, %v1224_v40 }
0x159e   :  { %v1248_v57 = vsel %vm390_vm3, %v1230_v56, 0.0  ;;  %v1231_v13 = vmul.f32 %v1873_v39, %v1224_v40 }
0x159f   :  { %1205 = vadd.xlane.f32.xlu0 %v1204_v33  ;;  %v1254_v19 = vsel %vm390_vm3, %v1232_v8, 0.0 }
0x15a0   :  { %1202 = vadd.xlane.f32.xlu1 %v1201_v36  ;;  %v1251_v10 = vsel %vm390_vm3, %v1231_v13, 0.0 }
0x15a3   :  { %1211 = vadd.xlane.f32.xlu0 %v1210_v41 }
0x15a4   :  { %1208 = vadd.xlane.f32.xlu1 %v1207_v45 }
0x15a7   :  { %1240 = vadd.xlane.f32.xlu0 %v1239_v49 }
0x15a8   :  { %1237 = vadd.xlane.f32.xlu1 %v1236_v51 }
0x15ab   :  { %1246 = vadd.xlane.f32.xlu0 %v1245_v54 }
0x15ac   :  { %1243 = vadd.xlane.f32.xlu1 %v1242_v55 }
0x15b0   :  { %1249 = vadd.xlane.f32.xlu1 %v1248_v57 }
0x15ea   :  { %v1156_v21 = vpop.permute.xlu0 %1155  ;;  %v1151_v48 = vpop.permute.xlu1 %1150 }
0x15eb   :  { %1158 = vst.msk [vmem:[#allocation4] sm:$0xff] %vm390_vm3, %v1156_v21  ;;  %1154 = vst.msk [vmem:[#allocation3 + $0x38] sm:$0xff] %vm390_vm3, %v1151_v48 }
0x15f2   :  { %v2419_v61 = vld [vmem:[#allocation4] sm:$0xff]  ;;  %v2421_v62 = vld [vmem:[#allocation3 + $0x38] sm:$0xff] }
0x15f3   :  { %1874 = vtanh.f32 %v2419_v61 }
0x15f4   :  { %1876 = vtanh.f32 %v2421_v62 }
0x1600   :  { %v1875_v20 = vpop.eup %1874 }
0x1601   :  { %v1877_v1 = vpop.eup %1876  ;;  %v1225_v2 = vmul.f32 %v1875_v20, %v1224_v40 }
0x1602   :  { %v1191_v3 = vmul.f32 %v1877_v1, %v2380_v15  ;;  %v1362_v15 = vld [vmem:[%s2500_s9] sm:$0xff] }
0x1603   :  { %v1233_v7 = vsel %vm390_vm3, %v1225_v2, 0.0  ;;  %1757 = vmatpush3.msra.mxu0 %v1362_v15 }
0x1604   :  { %1234 = vadd.xlane.f32.xlu0 %v1233_v7  ;;  %v1213_v16 = vsel %vm390_vm3, %v1191_v3, 0.0  ;;  %1761 = vmatprep.subr.mxu0 %v2062_v0 }
0x1605   :  { %1214 = vadd.xlane.f32.xlu1 %v1213_v16 }
0x1608   :  { %1252 = vadd.xlane.f32.xlu0 %v1251_v10 }
0x1609   :  { %1255 = vadd.xlane.f32.xlu1 %v1254_v19 }
0x1620   :  { %v1197_v23 = vpop.xlane.xlu0 %1196 }
0x1624   :  { %v1200_v25 = vpop.xlane.xlu0 %1199 }
0x1625   :  { %v1194_v24 = vpop.xlane.xlu1 %1193 }
0x1628   :  { %v1206_v28 = vpop.xlane.xlu0 %1205 }
0x1629   :  { %v1203_v27 = vpop.xlane.xlu1 %1202 }
0x162c   :  { %v1212_v30 = vpop.xlane.xlu0 %1211 }
0x162d   :  { %v1209_v29 = vpop.xlane.xlu1 %1208 }
0x1630   :  { %v1241_v32 = vpop.xlane.xlu0 %1240 }
0x1631   :  { %v1238_v31 = vpop.xlane.xlu1 %1237  ;;  %v1259_v43 = vadd.f32 %v1241_v32, %v1200_v25 }
0x1632   :  { %v1258_v47 = vadd.f32 %v1238_v31, %v1197_v23 }
0x1634   :  { %v1247_v34 = vpop.xlane.xlu0 %1246 }
0x1635   :  { %v1244_v33 = vpop.xlane.xlu1 %1243  ;;  %v1261_v40 = vadd.f32 %v1247_v34, %v1206_v28 }
0x1636   :  { %v1260_v49 = vadd.f32 %v1244_v33, %v1203_v27 }
0x1639   :  { %v1250_v35 = vpop.xlane.xlu1 %1249 }
0x163a   :  { %v1262_v41 = vadd.f32 %v1250_v35, %v1209_v29 }
0x163c   :  { %v1266_v53 = vmax.f32 %v1258_v47, %v1262_v41 }
0x168d   :  { %v1235_v36 = vpop.xlane.xlu0 %1234 }
0x168e   :  { %v1215_v37 = vpop.xlane.xlu1 %1214  ;;  %v1257_v38 = vadd.f32 %v1235_v36, %v1194_v24 }
0x1690   :  { %v1265_v50 = vmax.f32 %v1257_v38, %v1261_v40 }
0x1691   :  { %v1253_v42 = vpop.xlane.xlu0 %1252 }
0x1692   :  { %v1263_v45 = vadd.f32 %v1253_v42, %v1212_v30  ;;  %v1256_v46 = vpop.xlane.xlu1 %1255  ;;  %v1269_v55 = vmax.f32 %v1265_v50, %v1266_v53 }
0x1693   :  { %v1264_v51 = vadd.f32 %v1256_v46, %v1215_v37 }
0x1694   :  { %v1267_v52 = vmax.f32 %v1259_v43, %v1263_v45 }
0x1695   :  { %v1268_v54 = vmax.f32 %v1260_v49, %v1264_v51 }
0x1697   :  { %v1270_v56 = vmax.f32 %v1267_v52, %v1268_v54 }
0x1699   :  { %v1271_v57 = vmax.f32 %v1269_v55, %v1270_v56 }
0x169b   :  { %v1272_v21 = vsub.f32 %v1257_v38, %v1271_v57  ;;  %v1273_v48 = vsub.f32 %v1258_v47, %v1271_v57  ;;  %v1274_v63 = vsub.f32 %v1259_v43, %v1271_v57  ;;  %v1275_v39 = vsub.f32 %v1260_v49, %v1271_v57 }
0x169c   :  { %v1276_v2 = vsub.f32 %v1261_v40, %v1271_v57  ;;  %v1277_v7 = vsub.f32 %v1262_v41, %v1271_v57  ;;  %v1278_v16 = vsub.f32 %v1263_v45, %v1271_v57  ;;  %v1279_v10 = vsub.f32 %v1264_v51, %v1271_v57 }
0x169d   :  { %v1280_v20 = vmul.f32 1.442695, %v1272_v21  ;;  %v1282_v1 = vmul.f32 1.442695, %v1273_v48  ;;  %v1284_v3 = vmul.f32 1.442695, %v1274_v63 }
0x169e   :  { %v1286_v13 = vmul.f32 1.442695, %v1275_v39  ;;  %v1288_v8 = vmul.f32 1.442695, %v1276_v2  ;;  %v1290_v19 = vmul.f32 1.442695, %v1277_v7 }
0x169f   :  { %1878 = vpow2.f32 %v1280_v20  ;;  %v1292_v22 = vmul.f32 1.442695, %v1278_v16  ;;  %v1294_v15 = vmul.f32 1.442695, %v1279_v10 }
0x16a0   :  { %1880 = vpow2.f32 %v1282_v1 }
0x16a1   :  { %1882 = vpow2.f32 %v1284_v3 }
0x16a2   :  { %1884 = vpow2.f32 %v1286_v13 }
0x16a3   :  { %1886 = vpow2.f32 %v1288_v8 }
0x16a4   :  { %1888 = vpow2.f32 %v1290_v19 }
0x16a5   :  { %1890 = vpow2.f32 %v1292_v22 }
0x16a6   :  { %1892 = vpow2.f32 %v1294_v15 }
0x16ac   :  { %v1879_v23 = vpop.eup %1878 }
0x16ad   :  { %v1881_v24 = vpop.eup %1880 }
0x16ae   :  { %v1296_v25 = vadd.f32 %v1881_v24, %v1879_v23  ;;  %v1883_v27 = vpop.eup %1882 }
0x16af   :  { %v1885_v29 = vpop.eup %1884 }
0x16b0   :  { %v1297_v28 = vadd.f32 %v1883_v27, %v1296_v25  ;;  %v1887_v31 = vpop.eup %1886 }
0x16b1   :  { %v1889_v33 = vpop.eup %1888 }
0x16b2   :  { %v1298_v30 = vadd.f32 %v1885_v29, %v1297_v28  ;;  %v1891_v35 = vpop.eup %1890 }
0x16b3   :  { %v1893_v37 = vpop.eup %1892 }
0x16b4   :  { %v1299_v32 = vadd.f32 %v1887_v31, %v1298_v30 }
0x16b6   :  { %v1300_v34 = vadd.f32 %v1889_v33, %v1299_v32 }
0x16b8   :  { %v1301_v36 = vadd.f32 %v1891_v35, %v1300_v34 }
0x16ba   :  { %v1302_v38 = vadd.f32 %v1893_v37, %v1301_v36 }
0x16bc   :  { %1894 = vrcp.f32 %v1302_v38  ;;  %v1510_v38 = vld [vmem:[%s2501_s10] sm:$0xff] }
0x16c9   :  { %v1895_v40 = vpop.eup %1894 }
0x16ca   :  { %v1304_v41 = vmul.f32 %v1895_v40, %v1879_v23  ;;  %v1305_v42 = vmul.f32 %v1895_v40, %v1881_v24  ;;  %v1306_v43 = vmul.f32 %v1895_v40, %v1883_v27  ;;  %v1307_v45 = vmul.f32 %v1895_v40, %v1885_v29 }
0x16cb   :  { %v1308_v46 = vmul.f32 %v1895_v40, %v1887_v31  ;;  %v1309_v54 = vmul.f32 %v1895_v40, %v1889_v33  ;;  %v1310_v20 = vmul.f32 %v1895_v40, %v1891_v35  ;;  %v1311_v13 = vmul.f32 %v1895_v40, %v1893_v37 }
0x16cc   :  { %v1312_v47 = vmul.f32 %v1304_v41, %v2360_v44  ;;  %v1313_v49 = vmul.f32 %v1305_v42, %v2354_v6  ;;  %v1314_v50 = vmul.f32 %v1306_v43, %v2358_v59  ;;  %v1315_v51 = vmul.f32 %v1307_v45, %v2366_v11 }
0x16cd   :  { %v1316_v55 = vmul.f32 %v1308_v46, %v2364_v9  ;;  %v1335_v21 = vmul.f32 %v1304_v41, %v2419_v61  ;;  %v1336_v44 = vmul.f32 %v1305_v42, %v2378_v5  ;;  %v1337_v6 = vmul.f32 %v1306_v43, %v2376_v14 }
0x16ce   :  { %v1320_v52 = vsel %vm390_vm3, %v1312_v47, 0.0  ;;  %v1321_v53 = vsel %vm390_vm3, %v1313_v49, 0.0  ;;  %v1323_v57 = vsel %vm390_vm3, %v1314_v50, 0.0  ;;  %v1325_v59 = vsel %vm390_vm3, %v1315_v51, 0.0 }
0x16cf   :  { %v1322_v56 = vadd.f32 %v1321_v53, %v1320_v52  ;;  %v1338_v11 = vmul.f32 %v1307_v45, %v2387_v18  ;;  %v1343_v63 = vsel %vm390_vm3, %v1335_v21, 0.0  ;;  %v1344_v39 = vsel %vm390_vm3, %v1336_v44, 0.0 }
0x16d0   :  { %v1345_v1 = vadd.f32 %v1344_v39, %v1343_v63  ;;  %v1317_v2 = vmul.f32 %v1309_v54, %v2372_v4  ;;  %v1327_v61 = vsel %vm390_vm3, %v1316_v55, 0.0  ;;  %v1339_v5 = vmul.f32 %v1308_v46, %v2385_v17 }
0x16d1   :  { %v1324_v48 = vadd.f32 %v1323_v57, %v1322_v56  ;;  %v1346_v14 = vsel %vm390_vm3, %v1337_v6, 0.0  ;;  %v1340_v18 = vmul.f32 %v1309_v54, %v2394_v26  ;;  %v1348_v16 = vsel %vm390_vm3, %v1338_v11, 0.0 }
0x16d2   :  { %v1347_v7 = vadd.f32 %v1346_v14, %v1345_v1  ;;  %v1318_v10 = vmul.f32 %v1310_v20, %v2370_v12  ;;  %v1329_v19 = vsel %vm390_vm3, %v1317_v2, 0.0  ;;  %v1341_v4 = vmul.f32 %v1310_v20, %v2416_v60 }
0x16d3   :  { %v1326_v9 = vadd.f32 %v1325_v59, %v1324_v48  ;;  %v1350_v22 = vsel %vm390_vm3, %v1339_v5, 0.0  ;;  %v1342_v23 = vmul.f32 %v1311_v13, %v2414_v58  ;;  %v1352_v24 = vsel %vm390_vm3, %v1340_v18, 0.0  ;;  %v1360_v58 = vld [vmem:[%s2499_s8 + $0x8] sm:$0xff] }
0x16d4   :  { %v1349_v8 = vadd.f32 %v1348_v16, %v1347_v7  ;;  %v1319_v26 = vmul.f32 %v1311_v13, %v2421_v62  ;;  %v1331_v27 = vsel %vm390_vm3, %v1318_v10, 0.0  ;;  %v1354_v28 = vsel %vm390_vm3, %v1341_v4, 0.0  ;;  %v1359_v62 = vld [vmem:[%s2499_s8] sm:$0xff]  ;;  %s2067_s8 = smov [#allocation16]  }
0x16d5   :  { %v1328_v3 = vadd.f32 %v1327_v61, %v1326_v9  ;;  %v1356_v30 = vsel %vm390_vm3, %v1342_v23, 0.0  ;;  %s1531_s0 = sshll.u32 %s2067_s8, 4  ;;  %s1532_s0 = int_to_ptr.vmem [resolvable:$true] %s1531_s0 }
0x16d6   :  { %v1351_v17 = vadd.f32 %v1350_v22, %v1349_v8  ;;  %v1333_v31 = vsel %vm390_vm3, %v1319_v26, 0.0  ;;  %s2024_s10 = scalar_lea.vmem %s1532_s0, 128  ;;  %p2029_p3 = scmp.lt.s32.totalorder %s1532_s0, %s1532_s0 }
0x16d7   :  { %v1330_v15 = vadd.f32 %v1329_v19, %v1328_v3  ;;  %p2025_p2 = scmp.ne.s32.totalorder %s1532_s0, %s2024_s10  ;;  %p2030_p4 = scmp.lt.s32.totalorder %s2024_s10, %s2024_s10 }
0x16d8   :  { %v1353_v25 = vadd.f32 %v1352_v24, %v1351_v17 }
0x16d9   :  { %v1332_v12 = vadd.f32 %v1331_v27, %v1330_v15  ;;  %p2031_p5 = por %p2030_p4, %p2029_p3 }
0x16da   :  { %v1355_v29 = vadd.f32 %v1354_v28, %v1353_v25 }
0x16db   :  { %v1334_v32 = vadd.f32 %v1333_v31, %v1332_v12  ;;  %p2032_p6 = pnand %p2031_p5, %p2025_p2 }
0x16dc   :  { %v1357_v60 = vadd.f32 %v1356_v30, %v1355_v29 }
0x16de   :  { %1896 = vtanh.f32 %v1357_v60 }
0x16df   :  { %1898 = vtanh.f32 %v1334_v32 }
0x16eb   :  { %v1897_v33 = vpop.eup %1896 }
0x16ec   :  { %1759 = vmatmul.mubr.msk.f32.vlgmr.msra.gmra.mxu0 %vm390_vm3, %v1897_v33  ;;  %v1899_v34 = vpop.eup %1898 }
0x16ed   :  { %1762 = vmatpush3.msra.mxu0 %v1360_v58  ;;  %1765 = vmatprep.mubr.msk.f32.mxu0 %vm2063_vm0, %v2062_v0 }
0x16ee   :  { %1763 = vmatprep.subr.mxu0 %v2062_v0 }
0x16ef   :  { %1764 = vmatpush3.msra.mxu0 %v1359_v62 }
0x16f0   :  { %1766 = vmatmul.mubr.msk.f32.vlgmr.msra.gmra.mxu0 %vm390_vm3, %v1899_v34 }
0x17ac   :  { %v1433_v35 = vpop.f32.mrf.mxu0 }
0x17ae   :  { %v1760_v36 = vpop.f32.mrf.mxu0 }
0x17b0   :  { %v1506_v37 = vpop.f32.mrf.mxu0 }
0x17b1   :  { %v1507_v40 = vadd.f32 %v1506_v37, %v1433_v35 }
0x17b2   :  { %v1767_v41 = vpop.f32.mrf.mxu0 }
0x17b3   :  { %v1511_v42 = vadd.f32 %v1510_v38, %v1507_v40 }
0x17b5   :  { %v1513_v43 = vsel %vm1512_vm4, %v1511_v42, -inf }
0x17b6   :  { %1514 = vmax.xlane.f32.xlu0 %v1513_v43 }
0x183f   :  { %v1515_v45 = vpop.xlane.xlu0 %1514 }
0x1840   :  { %v1516_v0 = vsub.f32 %v1511_v42, %v1515_v45 }
0x1842   :  { %v1517_v46 = vmul.f32 1.442695, %v1516_v0 }
0x1844   :  { %1900 = vpow2.f32 %v1517_v46 }
0x1851   :  { %v1901_v47 = vpop.eup %1900 }
0x1852   :  { %v1519_v49 = vsel %vm1512_vm4, %v1901_v47, 0.0 }
0x1853   :  { %1520 = vadd.xlane.f32.xlu1 %v1519_v49 }
0x18dc   :  { %v1521_v50 = vpop.xlane.xlu1 %1520 }
0x18dd   :  { %1902 = vrcp.f32 %v1521_v50 }
0x18ea   :  { %v1903_v51 = vpop.eup %1902 }
0x18eb   :  { %v1523_v52 = vmul.f32 %v1903_v51, %v1901_v47 }
0x18ed   :  { %1524 = vst.msk [vmem:[#allocation16] sm:$0xff] %vm1512_vm4, %v1523_v52 }
0x18ee   :  { %2035 = shalt.err (!%p2032_p6)
}
0x18ef   :  { %1534 = dma.vmem_to_hbm [thread:$0]  %s1532_s0, 128, %s2502_s11, [#allocation7]  }
0x18f0   :  { %2052 = dma.done.wait [#allocation7], 128  }
0x18f1   :  { %2053 = vsyncadd [#allocation7], 4294967168 }
0x18f2   :  { %1538 = vsyncpa [#allocation6], 1 }
0x18f3   :  { %1539 = vsyncpa [#allocation9], 1 }
0x18f4   :  { %1540 = vsyncpa [#allocation12], 1 }
0x18f5   :  { %1541 = vsyncpa [#allocation15], 1 }
0x18f6   :  { %1542 = vsyncpa [#allocation7], 1 }

</bundles_post_ra>
